<compile_context>
chip_gen: v5e
topology: v5e:2x2
jax: 0.10.0
libtpu: 0.0.40
codegen_flags: <defaults>
</compile_context>

<pallas_src>
import math

import jax
import jax.numpy as jnp
import numpy as np
from jax import lax
from jax.experimental import pallas as pl
from jax.experimental.pallas import tpu as pltpu


def _layernorm_f32(x, gamma, beta, eps=1e-5):
    mu = jnp.mean(x, axis=-1, keepdims=True)
    var = jnp.mean(jnp.square(x - mu), axis=-1, keepdims=True)
    return (x - mu) * lax.rsqrt(var + eps) * gamma + beta


def make_encoder_layer_kernel(Bt, S, D, Fd, nhead, mm_dtype):
    hd = D // nhead
    scale = 1.0 / math.sqrt(hd)
    R = Bt * S  # rows presented to the MXU per grid step

    def kernel(src_ref, wqkv_ref, bqkv_ref, wo_ref, bo_ref,
               w1_ref, b1_ref, w2_ref, b2_ref,
               g1_ref, be1_ref, g2_ref, be2_ref,
               out_ref):
        # Flatten Bt batch elements into one (R, D) row slab: every dense matmul below
        # sees R = Bt*S rows instead of S, amortizing grid/DMA overhead and MXU fill.
        x = src_ref[...].reshape(R, D).astype(jnp.float32)

        # ---------------- self-attention ----------------
        # fused QKV projection: ONE (R, D) x (D, 3D) MXU matmul
        qkv = jnp.dot(x.astype(mm_dtype), wqkv_ref[...],
                      preferred_element_type=jnp.float32) + bqkv_ref[...]
        q = qkv[:, 0:D]
        k = qkv[:, D:2 * D]
        v = qkv[:, 2 * D:3 * D]

        # Per-batch-element, per-head scaled-dot-product attention.  Each head's (S, hd)
        # output is contracted against the matching (hd, D) sublane slice of W_o and
        # accumulated in registers: no VMEM scratch, no 8-lane masked stores, no reload.
        attn_rows = []
        for b in range(Bt):
            r0 = b * S
            qb = q[r0:r0 + S, :]
            kb = k[r0:r0 + S, :]
            vb = v[r0:r0 + S, :]
            acc_b = jnp.zeros((S, D), jnp.float32)
            for h in range(nhead):
                lo = h * hd
                qh = qb[:, lo:lo + hd]
                kh = kb[:, lo:lo + hd]
                vh = vb[:, lo:lo + hd]
                s = lax.dot_general(qh.astype(mm_dtype), kh.astype(mm_dtype),
                                    (((1,), (1,)), ((), ())),
                                    preferred_element_type=jnp.float32) * scale   # (S, S)
                m = jnp.max(s, axis=-1, keepdims=True)
                p = jnp.exp(s - m)                                                 # f32
                inv = pl.reciprocal(jnp.sum(p, axis=-1, keepdims=True), approx=True)
                o_h = jnp.dot(p.astype(mm_dtype), vh.astype(mm_dtype),
                              preferred_element_type=jnp.float32) * inv            # (S, hd)
                acc_b = acc_b + jnp.dot(o_h.astype(mm_dtype), wo_ref[lo:lo + hd, :],
                                        preferred_element_type=jnp.float32)
            attn_rows.append(acc_b)
        attn_out = jnp.concatenate(attn_rows, axis=0) + bo_ref[...]                # (R, D)

        # residual1 + norm1 (dropout1 = identity in eval mode) — f32 element-wise
        y1 = _layernorm_f32(x + attn_out, g1_ref[...], be1_ref[...])

        # ---------------- feed-forward ----------------
        hmid = jnp.maximum(
            jnp.dot(y1.astype(mm_dtype), w1_ref[...],
                    preferred_element_type=jnp.float32) + b1_ref[...], 0.0)
        ffn = jnp.dot(hmid.astype(mm_dtype), w2_ref[...],
                      preferred_element_type=jnp.float32) + b2_ref[...]

        # residual2 + norm2 (dropout2 = identity in eval mode)
        y2 = _layernorm_f32(y1 + ffn, g2_ref[...], be2_ref[...])
        out_ref[...] = y2.reshape(Bt, S, D).astype(out_ref.dtype)

    return kernel


def encoder_layer_forward_batch_first(x_bsd, params, *, nhead,
                                      mm_dtype=jnp.float32, block_batch=None):
    """x_bsd: (B, S, D) batch-first activations — no HBM transposes on this path."""
    B, S, D = x_bsd.shape
    Fd = params["lin1_w"].shape[0]
    f32 = jnp.float32

    # choose batch tile Bt: largest divisor of B with Bt*S around 256 MXU rows
    if block_batch is None:
        want = max(1, min(B, -(-256 // S)))  # ceil(256 / S), clamped to B
        Bt = max(d for d in range(1, B + 1) if B % d == 0 and d <= want)
    else:
        Bt = block_batch
    assert B % Bt == 0 and D % nhead == 0

    # pre-transpose weights (mm_dtype) / pre-reshape biases + LN params (f32) host-side
    wqkv_t = jnp.transpose(params["in_proj_w"]).astype(mm_dtype)     # (D, 3D)
    bqkv = params["in_proj_b"].reshape(1, 3 * D).astype(f32)
    wo_t = jnp.transpose(params["out_proj_w"]).astype(mm_dtype)      # (D, D)
    bo = params["out_proj_b"].reshape(1, D).astype(f32)
    w1_t = jnp.transpose(params["lin1_w"]).astype(mm_dtype)          # (D, F)
    b1 = params["lin1_b"].reshape(1, Fd).astype(f32)
    w2_t = jnp.transpose(params["lin2_w"]).astype(mm_dtype)          # (F, D)
    b2 = params["lin2_b"].reshape(1, D).astype(f32)
    g1 = params["ln1_g"].reshape(1, D).astype(f32)
    be1 = params["ln1_b"].reshape(1, D).astype(f32)
    g2 = params["ln2_g"].reshape(1, D).astype(f32)
    be2 = params["ln2_b"].reshape(1, D).astype(f32)

    # VMEM budget from actual buffer math (not a hard-coded constant)
    mm_b = jnp.dtype(mm_dtype).itemsize
    act_b = jnp.dtype(x_bsd.dtype).itemsize
    act_block = Bt * S * D * act_b
    weight_bytes = (D * 3 * D + D * D + D * Fd + Fd * D) * mm_b \
                 + (3 * D + Fd + 6 * D) * 4
    working = (Bt * S) * (3 * D + Fd + 6 * D) * 4          # in-kernel f32 temporaries (rough)
    vmem_limit = 2 * 2 * act_block + 2 * weight_bytes + working + (4 << 20)
    vmem_limit = int(min(max(vmem_limit, 32 << 20), 64 << 20))  # 64 MiB = v7x physical ceiling

    kernel = make_encoder_layer_kernel(Bt, S, D, Fd, nhead, mm_dtype)

    def const(b):
        return (0, 0)

    grid_spec = pltpu.PrefetchScalarGridSpec(
        num_scalar_prefetch=0,
        grid=(B // Bt,),
        in_specs=[
            pl.BlockSpec((Bt, S, D), lambda b: (b, 0, 0)),   # Bt batch elements per step
            pl.BlockSpec((D, 3 * D), const),                 # fused QKV weight
            pl.BlockSpec((1, 3 * D), const),
            pl.BlockSpec((D, D), const),                     # out_proj weight
            pl.BlockSpec((1, D), const),
            pl.BlockSpec((D, Fd), const),                    # linear1
            pl.BlockSpec((1, Fd), const),
            pl.BlockSpec((Fd, D), const),                    # linear2
            pl.BlockSpec((1, D), const),
            pl.BlockSpec((1, D), const),                     # norm1 gamma / beta
            pl.BlockSpec((1, D), const),
            pl.BlockSpec((1, D), const),                     # norm2 gamma / beta
            pl.BlockSpec((1, D), const),
        ],
        out_specs=pl.BlockSpec((Bt, S, D), lambda b: (b, 0, 0)),
    )

    return pl.pallas_call(
        kernel,
        out_shape=jax.ShapeDtypeStruct((B, S, D), x_bsd.dtype),
        grid_spec=grid_spec,
        compiler_params=pltpu.CompilerParams(
            dimension_semantics=("parallel",),
            vmem_limit_bytes=vmem_limit),
    )(x_bsd, wqkv_t, bqkv, wo_t, bo, w1_t, b1, w2_t, b2, g1, be1, g2, be2)


def transformer_encoder_layer_forward(src, params, *, nhead,
                                      mm_dtype=jnp.float32, block_batch=None):
    """src: (S, B, D) — PyTorch module layout (batch_first=False).

    Callers that already hold batch-first (B, S, D) activations should call
    encoder_layer_forward_batch_first directly and skip these two HBM transposes.
    """
    x = jnp.transpose(src, (1, 0, 2))
    out = encoder_layer_forward_batch_first(x, params, nhead=nhead,
                                            mm_dtype=mm_dtype, block_batch=block_batch)
    return jnp.transpose(out, (1, 0, 2))


def reference_forward(src, params, *, nhead):
    """Pure-JAX reference of the PyTorch forward (eval mode, norm='layer', no masks)."""
    S, B, D = src.shape
    hd = D // nhead
    eps = 1e-5

    def ln(x, g, b):
        mu = x.mean(-1, keepdims=True)
        var = ((x - mu) ** 2).mean(-1, keepdims=True)
        return (x - mu) / jnp.sqrt(var + eps) * g + b

    qkv = jnp.einsum("sbd,ed->sbe", src, params["in_proj_w"]) + params["in_proj_b"]
    q, k, v = jnp.split(qkv, 3, axis=-1)

    def split_heads(t):
        return t.reshape(S, B, nhead, hd).transpose(1, 2, 0, 3)     # (B, H, S, hd)

    qh, kh, vh = map(split_heads, (q, k, v))
    scores = jnp.einsum("bhqd,bhkd->bhqk", qh, kh) / math.sqrt(hd)
    p = jax.nn.softmax(scores, axis=-1)
    o = jnp.einsum("bhqk,bhkd->bhqd", p, vh)
    o = o.transpose(2, 0, 1, 3).reshape(S, B, D)
    attn = o @ params["out_proj_w"].T + params["out_proj_b"]

    x = ln(src + attn, params["ln1_g"], params["ln1_b"])
    hmid = jnp.maximum(x @ params["lin1_w"].T + params["lin1_b"], 0.0)
    ffn = hmid @ params["lin2_w"].T + params["lin2_b"]
    x = ln(x + ffn, params["ln2_g"], params["ln2_b"])
    return x


if __name__ == "__main__":
    # small deterministic config consistent with the module
    S, B, D = 16, 2, 32          # seq, batch, d_model
    nhead = 4                    # head_dim = 8
    Fd = 64                      # dim_feedforward

    key = jax.random.PRNGKey(0)
    ks = jax.random.split(key, 13)

    src = jax.random.normal(ks[0], (S, B, D), jnp.float32)

    params = {
        "in_proj_w": jax.random.normal(ks[1], (3 * D, D), jnp.float32) / math.sqrt(D),
        "in_proj_b": 0.1 * jax.random.normal(ks[2], (3 * D,), jnp.float32),
        "out_proj_w": jax.random.normal(ks[3], (D, D), jnp.float32) / math.sqrt(D),
        "out_proj_b": 0.1 * jax.random.normal(ks[4], (D,), jnp.float32),
        "lin1_w": jax.random.normal(ks[5], (Fd, D), jnp.float32) / math.sqrt(D),
        "lin1_b": 0.1 * jax.random.normal(ks[6], (Fd,), jnp.float32),
        "lin2_w": jax.random.normal(ks[7], (D, Fd), jnp.float32) / math.sqrt(Fd),
        "lin2_b": 0.1 * jax.random.normal(ks[8], (D,), jnp.float32),
        "ln1_g": 1.0 + 0.1 * jax.random.normal(ks[9], (D,), jnp.float32),
        "ln1_b": 0.1 * jax.random.normal(ks[10], (D,), jnp.float32),
        "ln2_g": 1.0 + 0.1 * jax.random.normal(ks[11], (D,), jnp.float32),
        "ln2_b": 0.1 * jax.random.normal(ks[12], (D,), jnp.float32),
    }

    ref = reference_forward(src, params, nhead=nhead)

    # f32 matmul operands: tight correctness check (approx reciprocal adds ~1e-3 rel)
    out_f32 = transformer_encoder_layer_forward(src, params, nhead=nhead,
                                                mm_dtype=jnp.float32)
    jax.block_until_ready(out_f32)
    np.testing.assert_allclose(np.asarray(out_f32), np.asarray(ref), rtol=5e-3, atol=5e-3)

    # bf16 matmul operands (v6e/v7x MXU-native path), f32 accumulation / softmax / LN stats:
    # looser sanity bound (bf16 operand rounding), still catches structural bugs.
    out_bf16 = transformer_encoder_layer_forward(src, params, nhead=nhead,
                                                 mm_dtype=jnp.bfloat16)
    jax.block_until_ready(out_bf16)
    np.testing.assert_allclose(np.asarray(out_bf16), np.asarray(ref), rtol=1e-1, atol=1e-1)

    print("KERNEL_OK")
</pallas_src>

<mosaic_0001>
module attributes {stable_mosaic.version = 11 : i64} {
  func.func @kernel(%arg0: i32, %arg1: memref<2x16x32xf32, #tpu.memory_space<vmem>>, %arg2: memref<32x96xf32, #tpu.memory_space<vmem>>, %arg3: memref<1x96xf32, #tpu.memory_space<vmem>>, %arg4: memref<32x32xf32, #tpu.memory_space<vmem>>, %arg5: memref<1x32xf32, #tpu.memory_space<vmem>>, %arg6: memref<32x64xf32, #tpu.memory_space<vmem>>, %arg7: memref<1x64xf32, #tpu.memory_space<vmem>>, %arg8: memref<64x32xf32, #tpu.memory_space<vmem>>, %arg9: memref<1x32xf32, #tpu.memory_space<vmem>>, %arg10: memref<1x32xf32, #tpu.memory_space<vmem>>, %arg11: memref<1x32xf32, #tpu.memory_space<vmem>>, %arg12: memref<1x32xf32, #tpu.memory_space<vmem>>, %arg13: memref<1x32xf32, #tpu.memory_space<vmem>>, %arg14: memref<2x16x32xf32, #tpu.memory_space<vmem>>) attributes {dimension_semantics = [#tpu.dimension_semantics<parallel>], iteration_bounds = array<i64: 1>, scalar_prefetch = 0 : i64, scratch_operands = 0 : i64, tpu.core_type = #tpu.core_type<tc>, window_params = [{transform_indices = @transform_0, window_bounds = array<i64: 2, 16, 32>}, {pipeline_mode = #tpu.pipeline_mode<synchronous>, transform_indices = @transform_1, window_bounds = array<i64: 32, 96>}, {pipeline_mode = #tpu.pipeline_mode<synchronous>, transform_indices = @transform_2, window_bounds = array<i64: 1, 96>}, {pipeline_mode = #tpu.pipeline_mode<synchronous>, transform_indices = @transform_3, window_bounds = array<i64: 32, 32>}, {pipeline_mode = #tpu.pipeline_mode<synchronous>, transform_indices = @transform_4, window_bounds = array<i64: 1, 32>}, {pipeline_mode = #tpu.pipeline_mode<synchronous>, transform_indices = @transform_5, window_bounds = array<i64: 32, 64>}, {pipeline_mode = #tpu.pipeline_mode<synchronous>, transform_indices = @transform_6, window_bounds = array<i64: 1, 64>}, {pipeline_mode = #tpu.pipeline_mode<synchronous>, transform_indices = @transform_7, window_bounds = array<i64: 64, 32>}, {pipeline_mode = #tpu.pipeline_mode<synchronous>, transform_indices = @transform_8, window_bounds = array<i64: 1, 32>}, {pipeline_mode = #tpu.pipeline_mode<synchronous>, transform_indices = @transform_9, window_bounds = array<i64: 1, 32>}, {pipeline_mode = #tpu.pipeline_mode<synchronous>, transform_indices = @transform_10, window_bounds = array<i64: 1, 32>}, {pipeline_mode = #tpu.pipeline_mode<synchronous>, transform_indices = @transform_11, window_bounds = array<i64: 1, 32>}, {pipeline_mode = #tpu.pipeline_mode<synchronous>, transform_indices = @transform_12, window_bounds = array<i64: 1, 32>}, {transform_indices = @transform_13, window_bounds = array<i64: 2, 16, 32>}]} {
    %c0 = arith.constant 0 : index
    %c0_0 = arith.constant 0 : index
    %c0_1 = arith.constant 0 : index
    %0 = vector.load %arg1[%c0, %c0_0, %c0_1] : memref<2x16x32xf32, #tpu.memory_space<vmem>>, vector<2x16x32xf32>
    %1 = vector.shape_cast %0 : vector<2x16x32xf32> to vector<32x32xf32>
    %c0_2 = arith.constant 0 : index
    %c0_3 = arith.constant 0 : index
    %2 = vector.load %arg2[%c0_2, %c0_3] : memref<32x96xf32, #tpu.memory_space<vmem>>, vector<32x96xf32>
    %cst = arith.constant dense<0.000000e+00> : vector<32x96xf32>
    %3 = tpu.matmul %1, %2, %cst {dimension_numbers = #tpu.dot_dimension_numbers<[1], [0], [0], [1], [0, 0, 1, 1], [], []>} : vector<32x32xf32>, vector<32x96xf32>, vector<32x96xf32> -> vector<32x96xf32>
    %c0_4 = arith.constant 0 : index
    %c0_5 = arith.constant 0 : index
    %4 = vector.load %arg3[%c0_4, %c0_5] : memref<1x96xf32, #tpu.memory_space<vmem>>, vector<1x96xf32>
    %5 = vector.broadcast %4 : vector<1x96xf32> to vector<32x96xf32>
    %6 = arith.addf %3, %5 : vector<32x96xf32>
    %7 = vector.extract_strided_slice %6 {offsets = [0, 0], sizes = [32, 32], strides = [1, 1]} : vector<32x96xf32> to vector<32x32xf32>
    %8 = vector.extract_strided_slice %6 {offsets = [0, 32], sizes = [32, 32], strides = [1, 1]} : vector<32x96xf32> to vector<32x32xf32>
    %9 = vector.extract_strided_slice %6 {offsets = [0, 64], sizes = [32, 32], strides = [1, 1]} : vector<32x96xf32> to vector<32x32xf32>
    %10 = vector.extract_strided_slice %7 {offsets = [0, 0], sizes = [16, 32], strides = [1, 1]} : vector<32x32xf32> to vector<16x32xf32>
    %11 = vector.extract_strided_slice %8 {offsets = [0, 0], sizes = [16, 32], strides = [1, 1]} : vector<32x32xf32> to vector<16x32xf32>
    %12 = vector.extract_strided_slice %9 {offsets = [0, 0], sizes = [16, 32], strides = [1, 1]} : vector<32x32xf32> to vector<16x32xf32>
    %cst_6 = arith.constant 0.000000e+00 : f32
    %13 = vector.broadcast %cst_6 : f32 to vector<16x32xf32>
    %14 = vector.extract_strided_slice %10 {offsets = [0, 0], sizes = [16, 8], strides = [1, 1]} : vector<16x32xf32> to vector<16x8xf32>
    %15 = vector.extract_strided_slice %11 {offsets = [0, 0], sizes = [16, 8], strides = [1, 1]} : vector<16x32xf32> to vector<16x8xf32>
    %16 = vector.extract_strided_slice %12 {offsets = [0, 0], sizes = [16, 8], strides = [1, 1]} : vector<16x32xf32> to vector<16x8xf32>
    %cst_7 = arith.constant dense<0.000000e+00> : vector<16x16xf32>
    %17 = tpu.matmul %14, %15, %cst_7 {dimension_numbers = #tpu.dot_dimension_numbers<[1], [1], [0], [0], [0, 0, 1, 0], [], []>} : vector<16x8xf32>, vector<16x8xf32>, vector<16x16xf32> -> vector<16x16xf32>
    %cst_8 = arith.constant 0.353553385 : f32
    %18 = vector.broadcast %cst_8 : f32 to vector<16x16xf32>
    %19 = arith.mulf %17, %18 : vector<16x16xf32>
    %cst_9 = arith.constant dense<0xFF800000> : vector<16xf32>
    %20 = vector.multi_reduction <maximumf>, %19, %cst_9 [1] : vector<16x16xf32> to vector<16xf32>
    %21 = vector.shape_cast %20 : vector<16xf32> to vector<16x1xf32>
    %22 = vector.broadcast %21 : vector<16x1xf32> to vector<16x16xf32>
    %23 = arith.subf %19, %22 : vector<16x16xf32>
    %24 = math.exp %23 : vector<16x16xf32>
    %cst_10 = arith.constant dense<0.000000e+00> : vector<16xf32>
    %25 = vector.multi_reduction <add>, %24, %cst_10 [1] : vector<16x16xf32> to vector<16xf32>
    %26 = vector.shape_cast %25 : vector<16xf32> to vector<16x1xf32>
    %27 = tpu.reciprocal %26 {approx = true} : vector<16x1xf32> -> vector<16x1xf32>
    %cst_11 = arith.constant dense<0.000000e+00> : vector<16x8xf32>
    %28 = tpu.matmul %24, %16, %cst_11 {dimension_numbers = #tpu.dot_dimension_numbers<[1], [0], [0], [1], [0, 0, 1, 1], [], []>} : vector<16x16xf32>, vector<16x8xf32>, vector<16x8xf32> -> vector<16x8xf32>
    %29 = vector.broadcast %27 : vector<16x1xf32> to vector<16x8xf32>
    %30 = arith.mulf %28, %29 : vector<16x8xf32>
    %c0_12 = arith.constant 0 : index
    %c0_13 = arith.constant 0 : index
    %31 = vector.load %arg4[%c0_12, %c0_13] : memref<32x32xf32, #tpu.memory_space<vmem>>, vector<8x32xf32>
    %cst_14 = arith.constant dense<0.000000e+00> : vector<16x32xf32>
    %32 = tpu.matmul %30, %31, %cst_14 {dimension_numbers = #tpu.dot_dimension_numbers<[1], [0], [0], [1], [0, 0, 1, 1], [], []>} : vector<16x8xf32>, vector<8x32xf32>, vector<16x32xf32> -> vector<16x32xf32>
    %33 = arith.addf %13, %32 : vector<16x32xf32>
    %34 = vector.extract_strided_slice %10 {offsets = [0, 8], sizes = [16, 8], strides = [1, 1]} : vector<16x32xf32> to vector<16x8xf32>
    %35 = vector.extract_strided_slice %11 {offsets = [0, 8], sizes = [16, 8], strides = [1, 1]} : vector<16x32xf32> to vector<16x8xf32>
    %36 = vector.extract_strided_slice %12 {offsets = [0, 8], sizes = [16, 8], strides = [1, 1]} : vector<16x32xf32> to vector<16x8xf32>
    %cst_15 = arith.constant dense<0.000000e+00> : vector<16x16xf32>
    %37 = tpu.matmul %34, %35, %cst_15 {dimension_numbers = #tpu.dot_dimension_numbers<[1], [1], [0], [0], [0, 0, 1, 0], [], []>} : vector<16x8xf32>, vector<16x8xf32>, vector<16x16xf32> -> vector<16x16xf32>
    %cst_16 = arith.constant 0.353553385 : f32
    %38 = vector.broadcast %cst_16 : f32 to vector<16x16xf32>
    %39 = arith.mulf %37, %38 : vector<16x16xf32>
    %cst_17 = arith.constant dense<0xFF800000> : vector<16xf32>
    %40 = vector.multi_reduction <maximumf>, %39, %cst_17 [1] : vector<16x16xf32> to vector<16xf32>
    %41 = vector.shape_cast %40 : vector<16xf32> to vector<16x1xf32>
    %42 = vector.broadcast %41 : vector<16x1xf32> to vector<16x16xf32>
    %43 = arith.subf %39, %42 : vector<16x16xf32>
    %44 = math.exp %43 : vector<16x16xf32>
    %cst_18 = arith.constant dense<0.000000e+00> : vector<16xf32>
    %45 = vector.multi_reduction <add>, %44, %cst_18 [1] : vector<16x16xf32> to vector<16xf32>
    %46 = vector.shape_cast %45 : vector<16xf32> to vector<16x1xf32>
    %47 = tpu.reciprocal %46 {approx = true} : vector<16x1xf32> -> vector<16x1xf32>
    %cst_19 = arith.constant dense<0.000000e+00> : vector<16x8xf32>
    %48 = tpu.matmul %44, %36, %cst_19 {dimension_numbers = #tpu.dot_dimension_numbers<[1], [0], [0], [1], [0, 0, 1, 1], [], []>} : vector<16x16xf32>, vector<16x8xf32>, vector<16x8xf32> -> vector<16x8xf32>
    %49 = vector.broadcast %47 : vector<16x1xf32> to vector<16x8xf32>
    %50 = arith.mulf %48, %49 : vector<16x8xf32>
    %c8 = arith.constant 8 : index
    %c0_20 = arith.constant 0 : index
    %51 = vector.load %arg4[%c8, %c0_20] : memref<32x32xf32, #tpu.memory_space<vmem>>, vector<8x32xf32>
    %cst_21 = arith.constant dense<0.000000e+00> : vector<16x32xf32>
    %52 = tpu.matmul %50, %51, %cst_21 {dimension_numbers = #tpu.dot_dimension_numbers<[1], [0], [0], [1], [0, 0, 1, 1], [], []>} : vector<16x8xf32>, vector<8x32xf32>, vector<16x32xf32> -> vector<16x32xf32>
    %53 = arith.addf %33, %52 : vector<16x32xf32>
    %54 = vector.extract_strided_slice %10 {offsets = [0, 16], sizes = [16, 8], strides = [1, 1]} : vector<16x32xf32> to vector<16x8xf32>
    %55 = vector.extract_strided_slice %11 {offsets = [0, 16], sizes = [16, 8], strides = [1, 1]} : vector<16x32xf32> to vector<16x8xf32>
    %56 = vector.extract_strided_slice %12 {offsets = [0, 16], sizes = [16, 8], strides = [1, 1]} : vector<16x32xf32> to vector<16x8xf32>
    %cst_22 = arith.constant dense<0.000000e+00> : vector<16x16xf32>
    %57 = tpu.matmul %54, %55, %cst_22 {dimension_numbers = #tpu.dot_dimension_numbers<[1], [1], [0], [0], [0, 0, 1, 0], [], []>} : vector<16x8xf32>, vector<16x8xf32>, vector<16x16xf32> -> vector<16x16xf32>
    %cst_23 = arith.constant 0.353553385 : f32
    %58 = vector.broadcast %cst_23 : f32 to vector<16x16xf32>
    %59 = arith.mulf %57, %58 : vector<16x16xf32>
    %cst_24 = arith.constant dense<0xFF800000> : vector<16xf32>
    %60 = vector.multi_reduction <maximumf>, %59, %cst_24 [1] : vector<16x16xf32> to vector<16xf32>
    %61 = vector.shape_cast %60 : vector<16xf32> to vector<16x1xf32>
    %62 = vector.broadcast %61 : vector<16x1xf32> to vector<16x16xf32>
    %63 = arith.subf %59, %62 : vector<16x16xf32>
    %64 = math.exp %63 : vector<16x16xf32>
    %cst_25 = arith.constant dense<0.000000e+00> : vector<16xf32>
    %65 = vector.multi_reduction <add>, %64, %cst_25 [1] : vector<16x16xf32> to vector<16xf32>
    %66 = vector.shape_cast %65 : vector<16xf32> to vector<16x1xf32>
    %67 = tpu.reciprocal %66 {approx = true} : vector<16x1xf32> -> vector<16x1xf32>
    %cst_26 = arith.constant dense<0.000000e+00> : vector<16x8xf32>
    %68 = tpu.matmul %64, %56, %cst_26 {dimension_numbers = #tpu.dot_dimension_numbers<[1], [0], [0], [1], [0, 0, 1, 1], [], []>} : vector<16x16xf32>, vector<16x8xf32>, vector<16x8xf32> -> vector<16x8xf32>
    %69 = vector.broadcast %67 : vector<16x1xf32> to vector<16x8xf32>
    %70 = arith.mulf %68, %69 : vector<16x8xf32>
    %c16 = arith.constant 16 : index
    %c0_27 = arith.constant 0 : index
    %71 = vector.load %arg4[%c16, %c0_27] : memref<32x32xf32, #tpu.memory_space<vmem>>, vector<8x32xf32>
    %cst_28 = arith.constant dense<0.000000e+00> : vector<16x32xf32>
    %72 = tpu.matmul %70, %71, %cst_28 {dimension_numbers = #tpu.dot_dimension_numbers<[1], [0], [0], [1], [0, 0, 1, 1], [], []>} : vector<16x8xf32>, vector<8x32xf32>, vector<16x32xf32> -> vector<16x32xf32>
    %73 = arith.addf %53, %72 : vector<16x32xf32>
    %74 = vector.extract_strided_slice %10 {offsets = [0, 24], sizes = [16, 8], strides = [1, 1]} : vector<16x32xf32> to vector<16x8xf32>
    %75 = vector.extract_strided_slice %11 {offsets = [0, 24], sizes = [16, 8], strides = [1, 1]} : vector<16x32xf32> to vector<16x8xf32>
    %76 = vector.extract_strided_slice %12 {offsets = [0, 24], sizes = [16, 8], strides = [1, 1]} : vector<16x32xf32> to vector<16x8xf32>
    %cst_29 = arith.constant dense<0.000000e+00> : vector<16x16xf32>
    %77 = tpu.matmul %74, %75, %cst_29 {dimension_numbers = #tpu.dot_dimension_numbers<[1], [1], [0], [0], [0, 0, 1, 0], [], []>} : vector<16x8xf32>, vector<16x8xf32>, vector<16x16xf32> -> vector<16x16xf32>
    %cst_30 = arith.constant 0.353553385 : f32
    %78 = vector.broadcast %cst_30 : f32 to vector<16x16xf32>
    %79 = arith.mulf %77, %78 : vector<16x16xf32>
    %cst_31 = arith.constant dense<0xFF800000> : vector<16xf32>
    %80 = vector.multi_reduction <maximumf>, %79, %cst_31 [1] : vector<16x16xf32> to vector<16xf32>
    %81 = vector.shape_cast %80 : vector<16xf32> to vector<16x1xf32>
    %82 = vector.broadcast %81 : vector<16x1xf32> to vector<16x16xf32>
    %83 = arith.subf %79, %82 : vector<16x16xf32>
    %84 = math.exp %83 : vector<16x16xf32>
    %cst_32 = arith.constant dense<0.000000e+00> : vector<16xf32>
    %85 = vector.multi_reduction <add>, %84, %cst_32 [1] : vector<16x16xf32> to vector<16xf32>
    %86 = vector.shape_cast %85 : vector<16xf32> to vector<16x1xf32>
    %87 = tpu.reciprocal %86 {approx = true} : vector<16x1xf32> -> vector<16x1xf32>
    %cst_33 = arith.constant dense<0.000000e+00> : vector<16x8xf32>
    %88 = tpu.matmul %84, %76, %cst_33 {dimension_numbers = #tpu.dot_dimension_numbers<[1], [0], [0], [1], [0, 0, 1, 1], [], []>} : vector<16x16xf32>, vector<16x8xf32>, vector<16x8xf32> -> vector<16x8xf32>
    %89 = vector.broadcast %87 : vector<16x1xf32> to vector<16x8xf32>
    %90 = arith.mulf %88, %89 : vector<16x8xf32>
    %c24 = arith.constant 24 : index
    %c0_34 = arith.constant 0 : index
    %91 = vector.load %arg4[%c24, %c0_34] : memref<32x32xf32, #tpu.memory_space<vmem>>, vector<8x32xf32>
    %cst_35 = arith.constant dense<0.000000e+00> : vector<16x32xf32>
    %92 = tpu.matmul %90, %91, %cst_35 {dimension_numbers = #tpu.dot_dimension_numbers<[1], [0], [0], [1], [0, 0, 1, 1], [], []>} : vector<16x8xf32>, vector<8x32xf32>, vector<16x32xf32> -> vector<16x32xf32>
    %93 = arith.addf %73, %92 : vector<16x32xf32>
    %94 = vector.extract_strided_slice %7 {offsets = [16, 0], sizes = [16, 32], strides = [1, 1]} : vector<32x32xf32> to vector<16x32xf32>
    %95 = vector.extract_strided_slice %8 {offsets = [16, 0], sizes = [16, 32], strides = [1, 1]} : vector<32x32xf32> to vector<16x32xf32>
    %96 = vector.extract_strided_slice %9 {offsets = [16, 0], sizes = [16, 32], strides = [1, 1]} : vector<32x32xf32> to vector<16x32xf32>
    %cst_36 = arith.constant 0.000000e+00 : f32
    %97 = vector.broadcast %cst_36 : f32 to vector<16x32xf32>
    %98 = vector.extract_strided_slice %94 {offsets = [0, 0], sizes = [16, 8], strides = [1, 1]} : vector<16x32xf32> to vector<16x8xf32>
    %99 = vector.extract_strided_slice %95 {offsets = [0, 0], sizes = [16, 8], strides = [1, 1]} : vector<16x32xf32> to vector<16x8xf32>
    %100 = vector.extract_strided_slice %96 {offsets = [0, 0], sizes = [16, 8], strides = [1, 1]} : vector<16x32xf32> to vector<16x8xf32>
    %cst_37 = arith.constant dense<0.000000e+00> : vector<16x16xf32>
    %101 = tpu.matmul %98, %99, %cst_37 {dimension_numbers = #tpu.dot_dimension_numbers<[1], [1], [0], [0], [0, 0, 1, 0], [], []>} : vector<16x8xf32>, vector<16x8xf32>, vector<16x16xf32> -> vector<16x16xf32>
    %cst_38 = arith.constant 0.353553385 : f32
    %102 = vector.broadcast %cst_38 : f32 to vector<16x16xf32>
    %103 = arith.mulf %101, %102 : vector<16x16xf32>
    %cst_39 = arith.constant dense<0xFF800000> : vector<16xf32>
    %104 = vector.multi_reduction <maximumf>, %103, %cst_39 [1] : vector<16x16xf32> to vector<16xf32>
    %105 = vector.shape_cast %104 : vector<16xf32> to vector<16x1xf32>
    %106 = vector.broadcast %105 : vector<16x1xf32> to vector<16x16xf32>
    %107 = arith.subf %103, %106 : vector<16x16xf32>
    %108 = math.exp %107 : vector<16x16xf32>
    %cst_40 = arith.constant dense<0.000000e+00> : vector<16xf32>
    %109 = vector.multi_reduction <add>, %108, %cst_40 [1] : vector<16x16xf32> to vector<16xf32>
    %110 = vector.shape_cast %109 : vector<16xf32> to vector<16x1xf32>
    %111 = tpu.reciprocal %110 {approx = true} : vector<16x1xf32> -> vector<16x1xf32>
    %cst_41 = arith.constant dense<0.000000e+00> : vector<16x8xf32>
    %112 = tpu.matmul %108, %100, %cst_41 {dimension_numbers = #tpu.dot_dimension_numbers<[1], [0], [0], [1], [0, 0, 1, 1], [], []>} : vector<16x16xf32>, vector<16x8xf32>, vector<16x8xf32> -> vector<16x8xf32>
    %113 = vector.broadcast %111 : vector<16x1xf32> to vector<16x8xf32>
    %114 = arith.mulf %112, %113 : vector<16x8xf32>
    %c0_42 = arith.constant 0 : index
    %c0_43 = arith.constant 0 : index
    %115 = vector.load %arg4[%c0_42, %c0_43] : memref<32x32xf32, #tpu.memory_space<vmem>>, vector<8x32xf32>
    %cst_44 = arith.constant dense<0.000000e+00> : vector<16x32xf32>
    %116 = tpu.matmul %114, %115, %cst_44 {dimension_numbers = #tpu.dot_dimension_numbers<[1], [0], [0], [1], [0, 0, 1, 1], [], []>} : vector<16x8xf32>, vector<8x32xf32>, vector<16x32xf32> -> vector<16x32xf32>
    %117 = arith.addf %97, %116 : vector<16x32xf32>
    %118 = vector.extract_strided_slice %94 {offsets = [0, 8], sizes = [16, 8], strides = [1, 1]} : vector<16x32xf32> to vector<16x8xf32>
    %119 = vector.extract_strided_slice %95 {offsets = [0, 8], sizes = [16, 8], strides = [1, 1]} : vector<16x32xf32> to vector<16x8xf32>
    %120 = vector.extract_strided_slice %96 {offsets = [0, 8], sizes = [16, 8], strides = [1, 1]} : vector<16x32xf32> to vector<16x8xf32>
    %cst_45 = arith.constant dense<0.000000e+00> : vector<16x16xf32>
    %121 = tpu.matmul %118, %119, %cst_45 {dimension_numbers = #tpu.dot_dimension_numbers<[1], [1], [0], [0], [0, 0, 1, 0], [], []>} : vector<16x8xf32>, vector<16x8xf32>, vector<16x16xf32> -> vector<16x16xf32>
    %cst_46 = arith.constant 0.353553385 : f32
    %122 = vector.broadcast %cst_46 : f32 to vector<16x16xf32>
    %123 = arith.mulf %121, %122 : vector<16x16xf32>
    %cst_47 = arith.constant dense<0xFF800000> : vector<16xf32>
    %124 = vector.multi_reduction <maximumf>, %123, %cst_47 [1] : vector<16x16xf32> to vector<16xf32>
    %125 = vector.shape_cast %124 : vector<16xf32> to vector<16x1xf32>
    %126 = vector.broadcast %125 : vector<16x1xf32> to vector<16x16xf32>
    %127 = arith.subf %123, %126 : vector<16x16xf32>
    %128 = math.exp %127 : vector<16x16xf32>
    %cst_48 = arith.constant dense<0.000000e+00> : vector<16xf32>
    %129 = vector.multi_reduction <add>, %128, %cst_48 [1] : vector<16x16xf32> to vector<16xf32>
    %130 = vector.shape_cast %129 : vector<16xf32> to vector<16x1xf32>
    %131 = tpu.reciprocal %130 {approx = true} : vector<16x1xf32> -> vector<16x1xf32>
    %cst_49 = arith.constant dense<0.000000e+00> : vector<16x8xf32>
    %132 = tpu.matmul %128, %120, %cst_49 {dimension_numbers = #tpu.dot_dimension_numbers<[1], [0], [0], [1], [0, 0, 1, 1], [], []>} : vector<16x16xf32>, vector<16x8xf32>, vector<16x8xf32> -> vector<16x8xf32>
    %133 = vector.broadcast %131 : vector<16x1xf32> to vector<16x8xf32>
    %134 = arith.mulf %132, %133 : vector<16x8xf32>
    %c8_50 = arith.constant 8 : index
    %c0_51 = arith.constant 0 : index
    %135 = vector.load %arg4[%c8_50, %c0_51] : memref<32x32xf32, #tpu.memory_space<vmem>>, vector<8x32xf32>
    %cst_52 = arith.constant dense<0.000000e+00> : vector<16x32xf32>
    %136 = tpu.matmul %134, %135, %cst_52 {dimension_numbers = #tpu.dot_dimension_numbers<[1], [0], [0], [1], [0, 0, 1, 1], [], []>} : vector<16x8xf32>, vector<8x32xf32>, vector<16x32xf32> -> vector<16x32xf32>
    %137 = arith.addf %117, %136 : vector<16x32xf32>
    %138 = vector.extract_strided_slice %94 {offsets = [0, 16], sizes = [16, 8], strides = [1, 1]} : vector<16x32xf32> to vector<16x8xf32>
    %139 = vector.extract_strided_slice %95 {offsets = [0, 16], sizes = [16, 8], strides = [1, 1]} : vector<16x32xf32> to vector<16x8xf32>
    %140 = vector.extract_strided_slice %96 {offsets = [0, 16], sizes = [16, 8], strides = [1, 1]} : vector<16x32xf32> to vector<16x8xf32>
    %cst_53 = arith.constant dense<0.000000e+00> : vector<16x16xf32>
    %141 = tpu.matmul %138, %139, %cst_53 {dimension_numbers = #tpu.dot_dimension_numbers<[1], [1], [0], [0], [0, 0, 1, 0], [], []>} : vector<16x8xf32>, vector<16x8xf32>, vector<16x16xf32> -> vector<16x16xf32>
    %cst_54 = arith.constant 0.353553385 : f32
    %142 = vector.broadcast %cst_54 : f32 to vector<16x16xf32>
    %143 = arith.mulf %141, %142 : vector<16x16xf32>
    %cst_55 = arith.constant dense<0xFF800000> : vector<16xf32>
    %144 = vector.multi_reduction <maximumf>, %143, %cst_55 [1] : vector<16x16xf32> to vector<16xf32>
    %145 = vector.shape_cast %144 : vector<16xf32> to vector<16x1xf32>
    %146 = vector.broadcast %145 : vector<16x1xf32> to vector<16x16xf32>
    %147 = arith.subf %143, %146 : vector<16x16xf32>
    %148 = math.exp %147 : vector<16x16xf32>
    %cst_56 = arith.constant dense<0.000000e+00> : vector<16xf32>
    %149 = vector.multi_reduction <add>, %148, %cst_56 [1] : vector<16x16xf32> to vector<16xf32>
    %150 = vector.shape_cast %149 : vector<16xf32> to vector<16x1xf32>
    %151 = tpu.reciprocal %150 {approx = true} : vector<16x1xf32> -> vector<16x1xf32>
    %cst_57 = arith.constant dense<0.000000e+00> : vector<16x8xf32>
    %152 = tpu.matmul %148, %140, %cst_57 {dimension_numbers = #tpu.dot_dimension_numbers<[1], [0], [0], [1], [0, 0, 1, 1], [], []>} : vector<16x16xf32>, vector<16x8xf32>, vector<16x8xf32> -> vector<16x8xf32>
    %153 = vector.broadcast %151 : vector<16x1xf32> to vector<16x8xf32>
    %154 = arith.mulf %152, %153 : vector<16x8xf32>
    %c16_58 = arith.constant 16 : index
    %c0_59 = arith.constant 0 : index
    %155 = vector.load %arg4[%c16_58, %c0_59] : memref<32x32xf32, #tpu.memory_space<vmem>>, vector<8x32xf32>
    %cst_60 = arith.constant dense<0.000000e+00> : vector<16x32xf32>
    %156 = tpu.matmul %154, %155, %cst_60 {dimension_numbers = #tpu.dot_dimension_numbers<[1], [0], [0], [1], [0, 0, 1, 1], [], []>} : vector<16x8xf32>, vector<8x32xf32>, vector<16x32xf32> -> vector<16x32xf32>
    %157 = arith.addf %137, %156 : vector<16x32xf32>
    %158 = vector.extract_strided_slice %94 {offsets = [0, 24], sizes = [16, 8], strides = [1, 1]} : vector<16x32xf32> to vector<16x8xf32>
    %159 = vector.extract_strided_slice %95 {offsets = [0, 24], sizes = [16, 8], strides = [1, 1]} : vector<16x32xf32> to vector<16x8xf32>
    %160 = vector.extract_strided_slice %96 {offsets = [0, 24], sizes = [16, 8], strides = [1, 1]} : vector<16x32xf32> to vector<16x8xf32>
    %cst_61 = arith.constant dense<0.000000e+00> : vector<16x16xf32>
    %161 = tpu.matmul %158, %159, %cst_61 {dimension_numbers = #tpu.dot_dimension_numbers<[1], [1], [0], [0], [0, 0, 1, 0], [], []>} : vector<16x8xf32>, vector<16x8xf32>, vector<16x16xf32> -> vector<16x16xf32>
    %cst_62 = arith.constant 0.353553385 : f32
    %162 = vector.broadcast %cst_62 : f32 to vector<16x16xf32>
    %163 = arith.mulf %161, %162 : vector<16x16xf32>
    %cst_63 = arith.constant dense<0xFF800000> : vector<16xf32>
    %164 = vector.multi_reduction <maximumf>, %163, %cst_63 [1] : vector<16x16xf32> to vector<16xf32>
    %165 = vector.shape_cast %164 : vector<16xf32> to vector<16x1xf32>
    %166 = vector.broadcast %165 : vector<16x1xf32> to vector<16x16xf32>
    %167 = arith.subf %163, %166 : vector<16x16xf32>
    %168 = math.exp %167 : vector<16x16xf32>
    %cst_64 = arith.constant dense<0.000000e+00> : vector<16xf32>
    %169 = vector.multi_reduction <add>, %168, %cst_64 [1] : vector<16x16xf32> to vector<16xf32>
    %170 = vector.shape_cast %169 : vector<16xf32> to vector<16x1xf32>
    %171 = tpu.reciprocal %170 {approx = true} : vector<16x1xf32> -> vector<16x1xf32>
    %cst_65 = arith.constant dense<0.000000e+00> : vector<16x8xf32>
    %172 = tpu.matmul %168, %160, %cst_65 {dimension_numbers = #tpu.dot_dimension_numbers<[1], [0], [0], [1], [0, 0, 1, 1], [], []>} : vector<16x16xf32>, vector<16x8xf32>, vector<16x8xf32> -> vector<16x8xf32>
    %173 = vector.broadcast %171 : vector<16x1xf32> to vector<16x8xf32>
    %174 = arith.mulf %172, %173 : vector<16x8xf32>
    %c24_66 = arith.constant 24 : index
    %c0_67 = arith.constant 0 : index
    %175 = vector.load %arg4[%c24_66, %c0_67] : memref<32x32xf32, #tpu.memory_space<vmem>>, vector<8x32xf32>
    %cst_68 = arith.constant dense<0.000000e+00> : vector<16x32xf32>
    %176 = tpu.matmul %174, %175, %cst_68 {dimension_numbers = #tpu.dot_dimension_numbers<[1], [0], [0], [1], [0, 0, 1, 1], [], []>} : vector<16x8xf32>, vector<8x32xf32>, vector<16x32xf32> -> vector<16x32xf32>
    %177 = arith.addf %157, %176 : vector<16x32xf32>
    %178 = tpu.concatenate %93, %177 in 0 : vector<16x32xf32>, vector<16x32xf32> -> vector<32x32xf32>
    %c0_69 = arith.constant 0 : index
    %c0_70 = arith.constant 0 : index
    %179 = vector.load %arg5[%c0_69, %c0_70] : memref<1x32xf32, #tpu.memory_space<vmem>>, vector<1x32xf32>
    %180 = vector.broadcast %179 : vector<1x32xf32> to vector<32x32xf32>
    %181 = arith.addf %178, %180 : vector<32x32xf32>
    %182 = arith.addf %1, %181 : vector<32x32xf32>
    %c0_71 = arith.constant 0 : index
    %c0_72 = arith.constant 0 : index
    %183 = vector.load %arg10[%c0_71, %c0_72] : memref<1x32xf32, #tpu.memory_space<vmem>>, vector<1x32xf32>
    %c0_73 = arith.constant 0 : index
    %c0_74 = arith.constant 0 : index
    %184 = vector.load %arg11[%c0_73, %c0_74] : memref<1x32xf32, #tpu.memory_space<vmem>>, vector<1x32xf32>
    %cst_75 = arith.constant dense<0.000000e+00> : vector<32xf32>
    %185 = vector.multi_reduction <add>, %182, %cst_75 [1] : vector<32x32xf32> to vector<32xf32>
    %186 = vector.shape_cast %185 : vector<32xf32> to vector<32x1xf32>
    %cst_76 = arith.constant 3.200000e+01 : f32
    %187 = vector.broadcast %cst_76 : f32 to vector<32x1xf32>
    %188 = arith.divf %186, %187 : vector<32x1xf32>
    %189 = vector.broadcast %188 : vector<32x1xf32> to vector<32x32xf32>
    %190 = arith.subf %182, %189 : vector<32x32xf32>
    %191 = arith.mulf %190, %190 : vector<32x32xf32>
    %cst_77 = arith.constant dense<0.000000e+00> : vector<32xf32>
    %192 = vector.multi_reduction <add>, %191, %cst_77 [1] : vector<32x32xf32> to vector<32xf32>
    %193 = vector.shape_cast %192 : vector<32xf32> to vector<32x1xf32>
    %cst_78 = arith.constant 3.200000e+01 : f32
    %194 = vector.broadcast %cst_78 : f32 to vector<32x1xf32>
    %195 = arith.divf %193, %194 : vector<32x1xf32>
    %196 = vector.broadcast %188 : vector<32x1xf32> to vector<32x32xf32>
    %197 = arith.subf %182, %196 : vector<32x32xf32>
    %cst_79 = arith.constant 9.99999974E-6 : f32
    %198 = vector.broadcast %cst_79 : f32 to vector<32x1xf32>
    %199 = arith.addf %195, %198 : vector<32x1xf32>
    %200 = math.rsqrt %199 : vector<32x1xf32>
    %201 = vector.broadcast %200 : vector<32x1xf32> to vector<32x32xf32>
    %202 = arith.mulf %197, %201 : vector<32x32xf32>
    %203 = vector.broadcast %183 : vector<1x32xf32> to vector<32x32xf32>
    %204 = arith.mulf %202, %203 : vector<32x32xf32>
    %205 = vector.broadcast %184 : vector<1x32xf32> to vector<32x32xf32>
    %206 = arith.addf %204, %205 : vector<32x32xf32>
    %c0_80 = arith.constant 0 : index
    %c0_81 = arith.constant 0 : index
    %207 = vector.load %arg6[%c0_80, %c0_81] : memref<32x64xf32, #tpu.memory_space<vmem>>, vector<32x64xf32>
    %cst_82 = arith.constant dense<0.000000e+00> : vector<32x64xf32>
    %208 = tpu.matmul %206, %207, %cst_82 {dimension_numbers = #tpu.dot_dimension_numbers<[1], [0], [0], [1], [0, 0, 1, 1], [], []>} : vector<32x32xf32>, vector<32x64xf32>, vector<32x64xf32> -> vector<32x64xf32>
    %c0_83 = arith.constant 0 : index
    %c0_84 = arith.constant 0 : index
    %209 = vector.load %arg7[%c0_83, %c0_84] : memref<1x64xf32, #tpu.memory_space<vmem>>, vector<1x64xf32>
    %210 = vector.broadcast %209 : vector<1x64xf32> to vector<32x64xf32>
    %211 = arith.addf %208, %210 : vector<32x64xf32>
    %cst_85 = arith.constant 0.000000e+00 : f32
    %212 = vector.broadcast %cst_85 : f32 to vector<32x64xf32>
    %213 = arith.maximumf %211, %212 : vector<32x64xf32>
    %c0_86 = arith.constant 0 : index
    %c0_87 = arith.constant 0 : index
    %214 = vector.load %arg8[%c0_86, %c0_87] : memref<64x32xf32, #tpu.memory_space<vmem>>, vector<64x32xf32>
    %cst_88 = arith.constant dense<0.000000e+00> : vector<32x32xf32>
    %215 = tpu.matmul %213, %214, %cst_88 {dimension_numbers = #tpu.dot_dimension_numbers<[1], [0], [0], [1], [0, 0, 1, 1], [], []>} : vector<32x64xf32>, vector<64x32xf32>, vector<32x32xf32> -> vector<32x32xf32>
    %c0_89 = arith.constant 0 : index
    %c0_90 = arith.constant 0 : index
    %216 = vector.load %arg9[%c0_89, %c0_90] : memref<1x32xf32, #tpu.memory_space<vmem>>, vector<1x32xf32>
    %217 = vector.broadcast %216 : vector<1x32xf32> to vector<32x32xf32>
    %218 = arith.addf %215, %217 : vector<32x32xf32>
    %219 = arith.addf %206, %218 : vector<32x32xf32>
    %c0_91 = arith.constant 0 : index
    %c0_92 = arith.constant 0 : index
    %220 = vector.load %arg12[%c0_91, %c0_92] : memref<1x32xf32, #tpu.memory_space<vmem>>, vector<1x32xf32>
    %c0_93 = arith.constant 0 : index
    %c0_94 = arith.constant 0 : index
    %221 = vector.load %arg13[%c0_93, %c0_94] : memref<1x32xf32, #tpu.memory_space<vmem>>, vector<1x32xf32>
    %cst_95 = arith.constant dense<0.000000e+00> : vector<32xf32>
    %222 = vector.multi_reduction <add>, %219, %cst_95 [1] : vector<32x32xf32> to vector<32xf32>
    %223 = vector.shape_cast %222 : vector<32xf32> to vector<32x1xf32>
    %cst_96 = arith.constant 3.200000e+01 : f32
    %224 = vector.broadcast %cst_96 : f32 to vector<32x1xf32>
    %225 = arith.divf %223, %224 : vector<32x1xf32>
    %226 = vector.broadcast %225 : vector<32x1xf32> to vector<32x32xf32>
    %227 = arith.subf %219, %226 : vector<32x32xf32>
    %228 = arith.mulf %227, %227 : vector<32x32xf32>
    %cst_97 = arith.constant dense<0.000000e+00> : vector<32xf32>
    %229 = vector.multi_reduction <add>, %228, %cst_97 [1] : vector<32x32xf32> to vector<32xf32>
    %230 = vector.shape_cast %229 : vector<32xf32> to vector<32x1xf32>
    %cst_98 = arith.constant 3.200000e+01 : f32
    %231 = vector.broadcast %cst_98 : f32 to vector<32x1xf32>
    %232 = arith.divf %230, %231 : vector<32x1xf32>
    %233 = vector.broadcast %225 : vector<32x1xf32> to vector<32x32xf32>
    %234 = arith.subf %219, %233 : vector<32x32xf32>
    %cst_99 = arith.constant 9.99999974E-6 : f32
    %235 = vector.broadcast %cst_99 : f32 to vector<32x1xf32>
    %236 = arith.addf %232, %235 : vector<32x1xf32>
    %237 = math.rsqrt %236 : vector<32x1xf32>
    %238 = vector.broadcast %237 : vector<32x1xf32> to vector<32x32xf32>
    %239 = arith.mulf %234, %238 : vector<32x32xf32>
    %240 = vector.broadcast %220 : vector<1x32xf32> to vector<32x32xf32>
    %241 = arith.mulf %239, %240 : vector<32x32xf32>
    %242 = vector.broadcast %221 : vector<1x32xf32> to vector<32x32xf32>
    %243 = arith.addf %241, %242 : vector<32x32xf32>
    %244 = vector.shape_cast %243 : vector<32x32xf32> to vector<2x16x32xf32>
    %c0_100 = arith.constant 0 : index
    %c0_101 = arith.constant 0 : index
    %c0_102 = arith.constant 0 : index
    %245 = vector.load %arg14[%c0_100, %c0_101, %c0_102] : memref<2x16x32xf32, #tpu.memory_space<vmem>>, vector<2x16x32xf32>
    tpu.vector_store %arg14[%c0_100, %c0_101, %c0_102], %244 {strides = array<i32>} : memref<2x16x32xf32, #tpu.memory_space<vmem>>, vector<2x16x32xf32>,
    return
  }
  func.func @transform_0(%arg0: i32) -> (i32, i32, i32) {
    %c0_i32 = arith.constant 0 : i32
    %c0_i32_0 = arith.constant 0 : i32
    %c0_i32_1 = arith.constant 0 : i32
    return %arg0, %c0_i32, %c0_i32_0 : i32, i32, i32
  }
  func.func @transform_1(%arg0: i32) -> (i32, i32) {
    %c0_i32 = arith.constant 0 : i32
    %c0_i32_0 = arith.constant 0 : i32
    %c0_i32_1 = arith.constant 0 : i32
    return %c0_i32, %c0_i32_0 : i32, i32
  }
  func.func @transform_2(%arg0: i32) -> (i32, i32) {
    %c0_i32 = arith.constant 0 : i32
    %c0_i32_0 = arith.constant 0 : i32
    %c0_i32_1 = arith.constant 0 : i32
    return %c0_i32, %c0_i32_0 : i32, i32
  }
  func.func @transform_3(%arg0: i32) -> (i32, i32) {
    %c0_i32 = arith.constant 0 : i32
    %c0_i32_0 = arith.constant 0 : i32
    %c0_i32_1 = arith.constant 0 : i32
    return %c0_i32, %c0_i32_0 : i32, i32
  }
  func.func @transform_4(%arg0: i32) -> (i32, i32) {
    %c0_i32 = arith.constant 0 : i32
    %c0_i32_0 = arith.constant 0 : i32
    %c0_i32_1 = arith.constant 0 : i32
    return %c0_i32, %c0_i32_0 : i32, i32
  }
  func.func @transform_5(%arg0: i32) -> (i32, i32) {
    %c0_i32 = arith.constant 0 : i32
    %c0_i32_0 = arith.constant 0 : i32
    %c0_i32_1 = arith.constant 0 : i32
    return %c0_i32, %c0_i32_0 : i32, i32
  }
  func.func @transform_6(%arg0: i32) -> (i32, i32) {
    %c0_i32 = arith.constant 0 : i32
    %c0_i32_0 = arith.constant 0 : i32
    %c0_i32_1 = arith.constant 0 : i32
    return %c0_i32, %c0_i32_0 : i32, i32
  }
  func.func @transform_7(%arg0: i32) -> (i32, i32) {
    %c0_i32 = arith.constant 0 : i32
    %c0_i32_0 = arith.constant 0 : i32
    %c0_i32_1 = arith.constant 0 : i32
    return %c0_i32, %c0_i32_0 : i32, i32
  }
  func.func @transform_8(%arg0: i32) -> (i32, i32) {
    %c0_i32 = arith.constant 0 : i32
    %c0_i32_0 = arith.constant 0 : i32
    %c0_i32_1 = arith.constant 0 : i32
    return %c0_i32, %c0_i32_0 : i32, i32
  }
  func.func @transform_9(%arg0: i32) -> (i32, i32) {
    %c0_i32 = arith.constant 0 : i32
    %c0_i32_0 = arith.constant 0 : i32
    %c0_i32_1 = arith.constant 0 : i32
    return %c0_i32, %c0_i32_0 : i32, i32
  }
  func.func @transform_10(%arg0: i32) -> (i32, i32) {
    %c0_i32 = arith.constant 0 : i32
    %c0_i32_0 = arith.constant 0 : i32
    %c0_i32_1 = arith.constant 0 : i32
    return %c0_i32, %c0_i32_0 : i32, i32
  }
  func.func @transform_11(%arg0: i32) -> (i32, i32) {
    %c0_i32 = arith.constant 0 : i32
    %c0_i32_0 = arith.constant 0 : i32
    %c0_i32_1 = arith.constant 0 : i32
    return %c0_i32, %c0_i32_0 : i32, i32
  }
  func.func @transform_12(%arg0: i32) -> (i32, i32) {
    %c0_i32 = arith.constant 0 : i32
    %c0_i32_0 = arith.constant 0 : i32
    %c0_i32_1 = arith.constant 0 : i32
    return %c0_i32, %c0_i32_0 : i32, i32
  }
  func.func @transform_13(%arg0: i32) -> (i32, i32, i32) {
    %c0_i32 = arith.constant 0 : i32
    %c0_i32_0 = arith.constant 0 : i32
    %c0_i32_1 = arith.constant 0 : i32
    return %arg0, %c0_i32, %c0_i32_0 : i32, i32, i32
  }
}

</mosaic_0001>

<bundles_post_ra>
// kernel: tpu_custom_call.1
= control target key start
LH: loop header
LB: loop body
LE: loop exit
PB: predicated region body
PF: predicated region fallthrough
CT: control target
= control target key end

     0   :  { %18 = vsyncpa [#allocation3], 0  ;;  %s2310_s0 = inlined_call_operand.vmem [shape: f32[2,16,32], index: 0, kind: input, shape index: {}]   ;;  %s2311_s1 = inlined_call_operand.vmem [shape: f32[32,96], index: 1, kind: input, shape index: {}]   ;;  %s2312_s2 = inlined_call_operand.vmem [shape: f32[1,96], index: 2, kind: input, shape index: {}]   ;;  %s2313_s3 = inlined_call_operand.vmem [shape: f32[32,32], index: 3, kind: input, shape index: {}]   ;;  %s2314_s4 = inlined_call_operand.vmem [shape: f32[1,32], index: 4, kind: input, shape index: {}]   ;;  %s2315_s5 = inlined_call_operand.hbm [shape: f32[32,64], index: 5, kind: input, shape index: {}]   ;;  %s2316_s6 = inlined_call_operand.vmem [shape: f32[1,64], index: 6, kind: input, shape index: {}]   ;;  %s2317_s7 = inlined_call_operand.vmem [shape: f32[64,32], index: 7, kind: input, shape index: {}]   ;;  %s2318_s8 = inlined_call_operand.vmem [shape: f32[1,32], index: 8, kind: input, shape index: {}]   ;;  %s2319_s9 = inlined_call_operand.vmem [shape: f32[1,32], index: 9, kind: input, shape index: {}]   ;;  %s2320_s10 = inlined_call_operand.vmem [shape: f32[1,32], index: 10, kind: input, shape index: {}]   ;;  %s2321_s11 = inlined_call_operand.vmem [shape: f32[1,32], index: 11, kind: input, shape index: {}]   ;;  %s2322_s12 = inlined_call_operand.vmem [shape: f32[1,32], index: 12, kind: input, shape index: {}]   ;;  %s2323_s13 = inlined_call_operand.hbm [shape: f32[2,16,32], index: 13, kind: output, shape index: {}]  }
   0x1   :  { %19 = vsyncpa [#allocation4], 0  ;;  %s34_s27 = sshll.u32 %s2315_s5, 4  ;;  %s1780_s28 = smov [#allocation2]   ;;  %s35_s27 = int_to_ptr.hbm [resolvable:$true] %s34_s27 }
   0x2   :  { %s36_s29 = sshll.u32 %s1780_s28, 4  ;;  %s1781_s30 = smov 128   ;;  %s37_s29 = int_to_ptr.vmem [resolvable:$true] %s36_s29 }
   0x3   :  { %s1782_s14 = smov 8  }
   0x4   :  { %42 = dma.hbm_to_vmem [thread:$0]  %s35_s27, 512, %s37_s29, [#allocation3], %s1781_s30, %s1781_s30, %s1782_s14  }
   0x5   :  { %1776 = dma.done.wait [#allocation3], 512  }
   0x6   :  { %1777 = vsyncadd [#allocation3], 4294966784  ;;  %v68_v0 = vld [vmem:[%s2311_s1 + $0x18] sm:$0xff]  ;;  %v67_v1 = vld [vmem:[%s2311_s1 + $0x10] sm:$0xff]  ;;  %vm73_vm0 = vcmask 261120   ;;  %s1783_s27 = smov 120  }
   0x7   :  { %98 = vmatpush.msra.mxu0 %v68_v0  ;;  %v66_v2 = vld [vmem:[%s2311_s1 + $0x8] sm:$0xff]  ;;  %v65_v3 = vld [vmem:[%s2311_s1] sm:$0xff]  ;;  %s1784_s28 = smov 88   ;;  %s1785_s29 = smov 96   ;;  %v1932_v12 = vld [vmem:[%s2310_s0 + $0x10] sm:$0xff]  ;;  %vm121_vm1 = vcmask 64512  }
   0x8   :  { %v1887_v4 = vld [vmem:[%s2310_s0] sm:$0xff]  ;;  %v1894_v5 = vld [vmem:[%s2310_s0 + $0x8] sm:$0xff]  ;;  %s1787_s15 = smov 56   ;;  %v1939_v13 = vld [vmem:[%s2310_s0 + $0x18] sm:$0xff]  ;;  %vm155_vm2 = vcmask 130048   ;;  %s1788_s0 = smov 80  }
   0x9   :  { %99 = vmatpush.msra.mxu0 %v67_v1  ;;  %v1901_v6 = vld [vmem:[%s2312_s2] ss:$0 sm:$0xff]  ;;  %s1786_s2 = smov 64   ;;  %s1789_s19 = smov 112   ;;  %v2000_v1 = vld [vmem:[%s2313_s3 + $0x8] sm:$0xff] }
   0xa   :  { %s1790_s20 = smov 48   ;;  %s1791_s21 = smov 72  }
   0xb   :  { %100 = vmatpush.msra.mxu0 %v66_v2  ;;  %s1792_s22 = smov 104  }
   0xd   :  { %101 = vmatpush.msra.mxu0 %v65_v3 }
   0xe   :  { %1502 = vmatmul.msk.f32.vlgmr.msra.gmra.mxu0 %vm73_vm0, %v1887_v4 }
  0x16   :  { %1503 = vmatmul.msk.f32.gmra.mxu0 %vm73_vm0, %v1894_v5 }
  0x1e   :  { %1504 = vmatmul.msk.f32.gmra.mxu0 %vm73_vm0, %v1932_v12 }
  0x26   :  { %1505 = vmatmul.msk.f32.gmra.mxu0 %vm73_vm0, %v1939_v13 }
  0x8b   :  { %v103_v7 = vpop.f32.mrf.mxu0 }
  0x8c   :  { %v1904_v8 = vadd.f32 %v1901_v6, %v103_v7 }
  0x8e   :  { %214 = vrot.lane.b32.xlu2 %v1904_v8, %s1783_s27 }
  0x93   :  { %v106_v9 = vpop.f32.mrf.mxu0 }
  0x94   :  { %v1909_v10 = vadd.f32 %v1901_v6, %v106_v9 }
  0x96   :  { %220 = vrot.lane.b32.xlu1 %v1909_v10, %s1784_s28  ;;  %119 = vrot.lane.b32.xlu0 %v1909_v10, %s1785_s29  ;;  %v1919_v11 = vpack.i.bf16 %v1904_v8, %v1909_v10 }
  0x97   :  { %216 = vrot.lane.b32.xlu2 %v1909_v10, %s1783_s27 }
  0x9b   :  { %v109_v26 = vpop.f32.mrf.mxu0 }
  0x9c   :  { %v1986_v55 = vadd.f32 %v1901_v6, %v109_v26 }
  0x9e   :  { %218 = vrot.lane.b32.xlu1 %v1904_v8, %s1784_s28  ;;  %117 = vrot.lane.b32.xlu0 %v1904_v8, %s1785_s29 }
  0x9f   :  { %1599 = vrot.lane.b32.xlu2 %v1919_v11, %s1786_s2 }
  0xa3   :  { %v1957_v27 = vpop.f32.mrf.mxu0 }
  0xa6   :  { %1604 = vrot.lane.b32.xlu1 %v1919_v11, %s1787_s15 }
  0xe8   :  { %v215_v14 = vpop.permute.xlu2 %214 }
  0xf1   :  { %v217_v15 = vpop.permute.xlu2 %216 }
  0xf9   :  { %v1600_v18 = vpop.permute.xlu2 %1599 }
  0xfa   :  { %v1601_v21 = vunpack.i.l.bf16 %v1600_v18  ;;  %v1602_v22 = vunpack.i.h.bf16 %v1600_v18 }
 0x108   :  { %v221_v16 = vpop.permute.xlu1 %220  ;;  %v120_v17 = vpop.permute.xlu0 %119 }
 0x109   :  { %1506 = vmatpush.xpose.msk.msra.mxu1 %vm121_vm1, %v120_v17  ;;  %1578 = vmatpush.xpose.msk.msra.mxu2 %vm121_vm1, %v120_v17 }
 0x10a   :  { %1512 = vmatpush.xpose.msk.msrb.mxu0 %vm121_vm1, %v221_v16  ;;  %1580 = vmatpush.xpose.msk.msra.mxu3 %vm121_vm1, %v221_v16 }
 0x110   :  { %v219_v19 = vpop.permute.xlu1 %218  ;;  %v118_v20 = vpop.permute.xlu0 %117 }
 0x111   :  { %1507 = vmatpush.xpose.msk.msra.mxu1 %vm121_vm1, %v118_v20  ;;  %1579 = vmatpush.xpose.msk.msra.mxu2 %vm121_vm1, %v118_v20 }
 0x112   :  { %1513 = vmatpush.xpose.msk.msrb.mxu0 %vm121_vm1, %v219_v19  ;;  %1581 = vmatpush.xpose.msk.msra.mxu3 %vm121_vm1, %v219_v19 }
 0x114   :  { %1508 = vmatmul.msk.f32.vlgmr.msra.gmra.mxu1 %vm121_vm1, %v1904_v8  ;;  %1509 = vmatmul.msk.f32.vlgmr.msra.gmra.mxu2 %vm121_vm1, %v1909_v10 }
 0x115   :  { %202 = vmatpush.msrb.mxu2 %v1601_v21  ;;  %1514 = vmatmul.msk.f32.vlgmr.msrb.gmra.mxu0 %vm121_vm1, %v215_v14 }
 0x116   :  { %1515 = vmatmul.msk.f32.vlgmr.msra.gmra.mxu3 %vm121_vm1, %v217_v15  ;;  %334 = vmatpush.msrb.mxu1 %v2000_v1 }
 0x117   :  { %203 = vmatpush.msrb.mxu2 %v1602_v22 }
 0x118   :  { %v1605_v23 = vpop.permute.xlu1 %1604 }
 0x119   :  { %v1606_v24 = vunpack.i.l.bf16 %v1605_v23  ;;  %v1607_v25 = vunpack.i.h.bf16 %v1605_v23 }
 0x11b   :  { %301 = vmatpush.msra.mxu2 %v1606_v24 }
 0x11d   :  { %302 = vmatpush.msra.mxu2 %v1607_v25 }
 0x191   :  { %v147_v28 = vpop.f32.mrf.mxu1 }
 0x192   :  { %v153_v29 = vmul.f32 0.35355338, %v147_v28  ;;  %v247_v30 = vpop.f32.mrf.mxu0 }
 0x193   :  { %v253_v31 = vmul.f32 0.35355338, %v247_v30 }
 0x194   :  { %v156_v32 = vsel %vm155_vm2, %v153_v29, -inf }
 0x195   :  { %v255_v33 = vsel %vm155_vm2, %v253_v31, -inf  ;;  %157 = vmax.xlane.f32.xlu0 %v156_v32 }
 0x196   :  { %256 = vmax.xlane.f32.xlu2 %v255_v33 }
 0x197   :  { %v150_v34 = vpop.f32.mrf.mxu2 }
 0x198   :  { %v154_v35 = vmul.f32 0.35355338, %v150_v34 }
 0x199   :  { %v250_v37 = vpop.f32.mrf.mxu3 }
 0x19a   :  { %v159_v36 = vsel %vm155_vm2, %v154_v35, -inf  ;;  %v254_v38 = vmul.f32 0.35355338, %v250_v37 }
 0x19b   :  { %160 = vmax.xlane.f32.xlu1 %v159_v36 }
 0x19c   :  { %v258_v39 = vsel %vm155_vm2, %v254_v38, -inf }
 0x1a9   :  { %375 = vrot.lane.b32.xlu0 %v1904_v8, %s1788_s0 }
 0x1ae   :  { %377 = vrot.lane.b32.xlu2 %v1909_v10, %s1788_s0 }
 0x1b4   :  { %371 = vrot.lane.b32.xlu1 %v1904_v8, %s1789_s19 }
 0x1d3   :  { %259 = vmax.xlane.f32.xlu0 %v258_v39  ;;  %v2020_v39 = vadd.f32 %v1901_v6, %v1957_v27  ;;  %v469_v6 = vld [vmem:[%s2313_s3 + $0x10] sm:$0xff]  ;;  %v213_v27 = vld [vmem:[%s2313_s3] sm:$0xff] }
 0x1d4   :  { %491 = vmatpush.msra.mxu1 %v469_v6  ;;  %363 = vmatpush.msrb.mxu3 %v213_v27 }
 0x1e7   :  { %373 = vrot.lane.b32.xlu0 %v1909_v10, %s1789_s19 }
 0x1ef   :  { %1609 = vrot.lane.b32.xlu0 %v1919_v11, %s1790_s20 }
 0x208   :  { %v158_v40 = vpop.xlane.xlu0 %157 }
 0x209   :  { %v257_v41 = vpop.xlane.xlu2 %256  ;;  %v162_v42 = vsub.f32 %v153_v29, %v158_v40 }
 0x20a   :  { %v261_v43 = vsub.f32 %v253_v31, %v257_v41  ;;  %v2032_v41 = vpack.i.bf16 %v1986_v55, %v2020_v39 }
 0x20b   :  { %v164_v44 = vmul.f32 1.442695, %v162_v42 }
 0x20c   :  { %v263_v45 = vmul.f32 1.442695, %v261_v43 }
 0x20d   :  { %1646 = vpow2.f32 %v164_v44 }
 0x20e   :  { %v161_v46 = vpop.xlane.xlu1 %160  ;;  %1648 = vpow2.f32 %v263_v45 }
 0x20f   :  { %v163_v47 = vsub.f32 %v154_v35, %v161_v46 }
 0x211   :  { %v166_v48 = vmul.f32 1.442695, %v163_v47  ;;  %v378_v50 = vpop.permute.xlu2 %377 }
 0x213   :  { %v1973_v49 = vpop.eup %1646  ;;  %1650 = vpow2.f32 %v166_v48 }
 0x214   :  { %1510 = vmatmul.msk.f32.vlgmr.msrb.gmra.mxu2 %vm155_vm2, %v1973_v49  ;;  %v1649_v51 = vpop.eup %1648 }
 0x215   :  { %1522 = vmatpush.xpose.msk.msrb.mxu2 %vm121_vm1, %v378_v50  ;;  %v267_v52 = vsel %vm155_vm2, %v1649_v51, 0.0 }
 0x219   :  { %268 = vadd.xlane.f32.xlu0 %v267_v52  ;;  %v1979_v53 = vpop.eup %1650 }
 0x21a   :  { %v171_v40 = vsel %vm155_vm2, %v1979_v53, 0.0 }
 0x21b   :  { %v376_v54 = vpop.permute.xlu0 %375 }
 0x21c   :  { %1511 = vmatmul.msk.f32.gmra.mxu2 %vm155_vm2, %v1979_v53 }
 0x21d   :  { %1523 = vmatpush.xpose.msk.msrb.mxu2 %vm121_vm1, %v376_v54 }
 0x224   :  { %1516 = vmatmul.msk.f32.vlgmr.msra.gmra.mxu2 %vm155_vm2, %v1649_v51 }
 0x226   :  { %v372_v60 = vpop.permute.xlu1 %371 }
 0x22d   :  { %633 = vrot.lane.b32.xlu0 %v1986_v55, %s1785_s29 }
 0x235   :  { %505 = vrot.lane.b32.xlu0 %v1904_v8, %s1791_s21 }
 0x23d   :  { %503 = vrot.lane.b32.xlu0 %v1909_v10, %s1792_s22 }
 0x246   :  { %v260_v56 = vpop.xlane.xlu0 %259 }
 0x247   :  { %v262_v57 = vsub.f32 %v254_v38, %v260_v56  ;;  %v168_v38 = vsel %vm155_vm2, %v1973_v49, 0.0 }
 0x249   :  { %v265_v58 = vmul.f32 1.442695, %v262_v57 }
 0x24b   :  { %1652 = vpow2.f32 %v265_v58 }
 0x251   :  { %v1653_v59 = vpop.eup %1652 }
 0x252   :  { %1517 = vmatmul.msk.f32.gmra.mxu2 %vm155_vm2, %v1653_v59  ;;  %v270_v22 = vsel %vm155_vm2, %v1653_v59, 0.0 }
 0x259   :  { %v374_v61 = vpop.permute.xlu0 %373 }
 0x25a   :  { %1524 = vmatmul.msk.f32.vlgmr.msrb.gmra.mxu2 %vm121_vm1, %v372_v60 }
 0x261   :  { %v1610_v62 = vpop.permute.xlu0 %1609 }
 0x262   :  { %v1611_v63 = vunpack.i.l.bf16 %v1610_v62  ;;  %1525 = vmatmul.msk.f32.gmra.mxu2 %vm121_vm1, %v374_v61  ;;  %v1612_v0 = vunpack.i.h.bf16 %v1610_v62 }
 0x264   :  { %458 = vmatpush.msra.mxu0 %v1611_v63 }
 0x266   :  { %459 = vmatpush.msra.mxu0 %v1612_v0 }
 0x28c   :  { %v269_v3 = vpop.xlane.xlu0 %268 }
 0x28d   :  { %1654 = vrcp.f32 %v269_v3 }
 0x293   :  { %v1655_v9 = vpop.eup %1654 }
 0x297   :  { %v2003_v2 = vpop.f32.mrf.mxu2 }
 0x29f   :  { %v2005_v7 = vpop.f32.mrf.mxu2  ;;  %v634_v53 = vpop.permute.xlu0 %633 }
 0x2a7   :  { %v304_v14 = vpop.f32.mrf.mxu2  ;;  %v506_v58 = vpop.permute.xlu0 %505 }
 0x2a8   :  { %v310_v15 = vmul.f32 %v1655_v9, %v304_v14 }
 0x2aa   :  { %1518 = vmatmul.msk.f32.vlgmr.msrb.gmra.mxu1 %vm121_vm1, %v310_v15 }
 0x2af   :  { %v504_v63 = vpop.permute.xlu0 %503 }
 0x2d5   :  { %v307_v16 = vpop.f32.mrf.mxu2 }
 0x2dd   :  { %v404_v17 = vpop.f32.mrf.mxu2 }
 0x2de   :  { %v410_v18 = vmul.f32 0.35355338, %v404_v17 }
 0x2e0   :  { %v412_v19 = vsel %vm155_vm2, %v410_v18, -inf }
 0x2e1   :  { %413 = vmax.xlane.f32.xlu2 %v412_v19 }
 0x2e5   :  { %v407_v20 = vpop.f32.mrf.mxu2 }
 0x2e6   :  { %v411_v21 = vmul.f32 0.35355338, %v407_v20 }
 0x2e8   :  { %v415_v23 = vsel %vm155_vm2, %v411_v21, -inf }
 0x2e9   :  { %271 = vadd.xlane.f32.xlu2 %v270_v22  ;;  %416 = vmax.xlane.f32.xlu1 %v415_v23 }
 0x327   :  { %v336_v0 = vpop.f32.mrf.mxu1 }
 0x354   :  { %v414_v24 = vpop.xlane.xlu2 %413 }
 0x355   :  { %v418_v25 = vsub.f32 %v410_v18, %v414_v24 }
 0x357   :  { %v420_v26 = vmul.f32 1.442695, %v418_v25 }
 0x359   :  { %1656 = vpow2.f32 %v420_v26 }
 0x35c   :  { %v272_v28 = vpop.xlane.xlu2 %271  ;;  %v417_v29 = vpop.xlane.xlu1 %416 }
 0x35d   :  { %1658 = vrcp.f32 %v272_v28  ;;  %v419_v30 = vsub.f32 %v411_v21, %v417_v29 }
 0x35f   :  { %v1657_v31 = vpop.eup %1656  ;;  %v422_v32 = vmul.f32 1.442695, %v419_v30 }
 0x360   :  { %1526 = vmatmul.msk.f32.vlgmr.msra.gmra.mxu0 %vm155_vm2, %v1657_v31  ;;  %v424_v33 = vsel %vm155_vm2, %v1657_v31, 0.0 }
 0x361   :  { %1660 = vpow2.f32 %v422_v32  ;;  %425 = vadd.xlane.f32.xlu1 %v424_v33 }
 0x363   :  { %v1659_v34 = vpop.eup %1658 }
 0x364   :  { %v311_v35 = vmul.f32 %v1659_v34, %v307_v16 }
 0x366   :  { %1519 = vmatmul.msk.f32.gmra.mxu1 %vm121_vm1, %v311_v35 }
 0x367   :  { %v1661_v36 = vpop.eup %1660 }
 0x368   :  { %1527 = vmatmul.msk.f32.gmra.mxu0 %vm155_vm2, %v1661_v36  ;;  %v427_v37 = vsel %vm155_vm2, %v1661_v36, 0.0 }
 0x369   :  { %428 = vadd.xlane.f32.xlu2 %v427_v37 }
 0x371   :  { %169 = vadd.xlane.f32.xlu2 %v168_v38 }
 0x379   :  { %172 = vadd.xlane.f32.xlu2 %v171_v40 }
 0x37a   :  { %635 = vrot.lane.b32.xlu1 %v2020_v39, %s1785_s29 }
 0x382   :  { %501 = vrot.lane.b32.xlu1 %v1904_v8, %s1792_s22 }
 0x391   :  { %507 = vrot.lane.b32.xlu2 %v1909_v10, %s1791_s21 }
 0x399   :  { %1614 = vrot.lane.b32.xlu2 %v2032_v41, %s1786_s2  ;;  %s1793_s2 = smov 40  }
 0x3d4   :  { %v426_v8 = vpop.xlane.xlu1 %425 }
 0x3d5   :  { %1662 = vrcp.f32 %v426_v8 }
 0x3db   :  { %v1663_v42 = vpop.eup %1662 }
 0x3dc   :  { %v429_v10 = vpop.xlane.xlu2 %428 }
 0x3dd   :  { %v461_v43 = vpop.f32.mrf.mxu0  ;;  %1664 = vrcp.f32 %v429_v10 }
 0x3de   :  { %v467_v44 = vmul.f32 %v1663_v42, %v461_v43 }
 0x3e0   :  { %1528 = vmatmul.msk.f32.vlgmr.msra.gmra.mxu1 %vm121_vm1, %v467_v44 }
 0x3e3   :  { %v1665_v46 = vpop.eup %1664 }
 0x3e4   :  { %v170_v45 = vpop.xlane.xlu2 %169 }
 0x3e5   :  { %1666 = vrcp.f32 %v170_v45  ;;  %v464_v47 = vpop.f32.mrf.mxu0 }
 0x3e6   :  { %v468_v48 = vmul.f32 %v1665_v46, %v464_v47 }
 0x3e8   :  { %1529 = vmatmul.msk.f32.gmra.mxu1 %vm121_vm1, %v468_v48 }
 0x3eb   :  { %v1667_v49 = vpop.eup %1666 }
 0x3ec   :  { %v173_v50 = vpop.xlane.xlu2 %172  ;;  %v636_v51 = vpop.permute.xlu1 %635  ;;  %v211_v52 = vmul.f32 %v1667_v49, %v2003_v2 }
 0x3ed   :  { %1668 = vrcp.f32 %v173_v50  ;;  %1538 = vmatpush.xpose.msk.msrb.mxu1 %vm121_vm1, %v636_v51 }
 0x3ee   :  { %1520 = vmatmul.msk.f32.vlgmr.msrb.gmra.mxu3 %vm121_vm1, %v211_v52 }
 0x3f1   :  { %1539 = vmatpush.xpose.msk.msrb.mxu1 %vm121_vm1, %v634_v53 }
 0x3f3   :  { %v1669_v54 = vpop.eup %1668 }
 0x3f4   :  { %v508_v56 = vpop.permute.xlu2 %507  ;;  %1540 = vmatmul.msk.f32.vlgmr.msrb.gmra.mxu1 %vm121_vm1, %v1986_v55  ;;  %v212_v57 = vmul.f32 %v1669_v54, %v2005_v7  ;;  %v502_v60 = vpop.permute.xlu1 %501 }
 0x3f5   :  { %846 = vmatpush.msra.mxu1 %v2000_v1  ;;  %1530 = vmatpush.xpose.msk.msra.mxu3 %vm121_vm1, %v508_v56  ;;  %v339_v1 = vpop.f32.mrf.mxu1 }
 0x3f6   :  { %1521 = vmatmul.msk.f32.gmra.mxu3 %vm121_vm1, %v212_v57 }
 0x3f7   :  { %1002 = vmatpush.msrb.mxu1 %v469_v6 }
 0x3f9   :  { %1531 = vmatpush.xpose.msk.msra.mxu3 %vm121_vm1, %v506_v58 }
 0x3fc   :  { %v1615_v59 = vpop.permute.xlu2 %1614  ;;  %1541 = vmatmul.msk.f32.gmra.mxu1 %vm121_vm1, %v2020_v39 }
 0x3fd   :  { %v1616_v61 = vunpack.i.l.bf16 %v1615_v59  ;;  %v1617_v62 = vunpack.i.h.bf16 %v1615_v59  ;;  %v2116_v59 = vld [vmem:[%s2313_s3 + $0x18] sm:$0xff] }
 0x3fe   :  { %1532 = vmatmul.msk.f32.vlgmr.msra.gmra.mxu3 %vm121_vm1, %v502_v60  ;;  %621 = vmatpush.msrb.mxu0 %v2116_v59 }
 0x3ff   :  { %716 = vmatpush.msrb.mxu3 %v1616_v61 }
 0x401   :  { %717 = vmatpush.msrb.mxu3 %v1617_v62 }
 0x403   :  { %875 = vmatpush.msra.mxu3 %v213_v27 }
 0x406   :  { %1533 = vmatmul.msk.f32.gmra.mxu3 %vm121_vm1, %v504_v63 }
 0x45d   :  { %v493_v2 = vpop.f32.mrf.mxu1 }
 0x465   :  { %v496_v3 = vpop.f32.mrf.mxu1 }
 0x471   :  { %v365_v7 = vpop.f32.mrf.mxu3  ;;  %v662_v9 = vpop.f32.mrf.mxu1 }
 0x472   :  { %v366_v14 = vadd.f32 %v365_v7, %v336_v0  ;;  %v668_v15 = vmul.f32 0.35355338, %v662_v9 }
 0x474   :  { %v670_v16 = vsel %vm155_vm2, %v668_v15, -inf  ;;  %v2060_v17 = vadd.f32 %v493_v2, %v366_v14 }
 0x475   :  { %671 = vmax.xlane.f32.xlu1 %v670_v16 }
 0x479   :  { %v368_v18 = vpop.f32.mrf.mxu3  ;;  %v665_v19 = vpop.f32.mrf.mxu1 }
 0x47a   :  { %v369_v20 = vadd.f32 %v368_v18, %v339_v1  ;;  %v669_v21 = vmul.f32 0.35355338, %v665_v19 }
 0x47c   :  { %v673_v22 = vsel %vm155_vm2, %v669_v21, -inf  ;;  %v2063_v23 = vadd.f32 %v496_v3, %v369_v20 }
 0x47d   :  { %674 = vmax.xlane.f32.xlu0 %v673_v22 }
 0x481   :  { %v534_v24 = vpop.f32.mrf.mxu3 }
 0x482   :  { %v540_v25 = vmul.f32 0.35355338, %v534_v24 }
 0x484   :  { %v542_v26 = vsel %vm155_vm2, %v540_v25, -inf }
 0x485   :  { %543 = vmax.xlane.f32.xlu2 %v542_v26 }
 0x489   :  { %v537_v28 = vpop.f32.mrf.mxu3 }
 0x48a   :  { %v541_v29 = vmul.f32 0.35355338, %v537_v28 }
 0x48c   :  { %v545_v30 = vsel %vm155_vm2, %v541_v29, -inf }
 0x48d   :  { %546 = vmax.xlane.f32.xlu1 %v545_v30 }
 0x491   :  { %1619 = vrot.lane.b32.xlu0 %v1919_v11, %s1793_s2 }
 0x499   :  { %731 = vrot.lane.b32.xlu0 %v1986_v55, %s1784_s28 }
 0x49d   :  { %727 = vrot.lane.b32.xlu2 %v1986_v55, %s1783_s27 }
 0x4a1   :  { %1018 = vrot.lane.b32.xlu0 %v2020_v39, %s1791_s21 }
 0x4a5   :  { %887 = vrot.lane.b32.xlu2 %v1986_v55, %s1788_s0 }
 0x4a6   :  { %733 = vrot.lane.b32.xlu1 %v2020_v39, %s1784_s28 }
 0x4a9   :  { %889 = vrot.lane.b32.xlu0 %v2020_v39, %s1788_s0 }
 0x4ae   :  { %729 = vrot.lane.b32.xlu1 %v2020_v39, %s1783_s27 }
 0x4b1   :  { %1012 = vrot.lane.b32.xlu0 %v1986_v55, %s1792_s22 }
 0x4b6   :  { %1016 = vrot.lane.b32.xlu1 %v1986_v55, %s1791_s21 }
 0x4b9   :  { %1014 = vrot.lane.b32.xlu0 %v2020_v39, %s1792_s22 }
 0x4e8   :  { %v672_v11 = vpop.xlane.xlu1 %671 }
 0x4e9   :  { %v676_v31 = vsub.f32 %v668_v15, %v672_v11 }
 0x4eb   :  { %v678_v32 = vmul.f32 1.442695, %v676_v31 }
 0x4ed   :  { %1670 = vpow2.f32 %v678_v32 }
 0x4f0   :  { %v675_v33 = vpop.xlane.xlu0 %674 }
 0x4f1   :  { %v677_v34 = vsub.f32 %v669_v21, %v675_v33 }
 0x4f3   :  { %v1671_v35 = vpop.eup %1670  ;;  %v680_v36 = vmul.f32 1.442695, %v677_v34 }
 0x4f4   :  { %1542 = vmatmul.msk.f32.vlgmr.msrb.gmra.mxu3 %vm155_vm2, %v1671_v35  ;;  %v682_v37 = vsel %vm155_vm2, %v1671_v35, 0.0 }
 0x4f5   :  { %1672 = vpow2.f32 %v680_v36  ;;  %683 = vadd.xlane.f32.xlu1 %v682_v37 }
 0x4f8   :  { %v544_v38 = vpop.xlane.xlu2 %543 }
 0x4f9   :  { %v548_v40 = vsub.f32 %v540_v25, %v544_v38 }
 0x4fb   :  { %v1673_v6 = vpop.eup %1672  ;;  %v550_v8 = vmul.f32 1.442695, %v548_v40 }
 0x4fc   :  { %1543 = vmatmul.msk.f32.gmra.mxu3 %vm155_vm2, %v1673_v6  ;;  %v685_v27 = vsel %vm155_vm2, %v1673_v6, 0.0 }
 0x4fd   :  { %686 = vadd.xlane.f32.xlu2 %v685_v27  ;;  %1674 = vpow2.f32 %v550_v8 }
 0x500   :  { %v547_v10 = vpop.xlane.xlu1 %546  ;;  %v728_v52 = vpop.permute.xlu2 %727 }
 0x501   :  { %v549_v42 = vsub.f32 %v541_v29, %v547_v10 }
 0x503   :  { %v552_v43 = vmul.f32 1.442695, %v549_v42  ;;  %v1620_v44 = vpop.permute.xlu0 %1619  ;;  %v1675_v47 = vpop.eup %1674 }
 0x504   :  { %v1621_v45 = vunpack.i.l.bf16 %v1620_v44  ;;  %v1622_v46 = vunpack.i.h.bf16 %v1620_v44 }
 0x505   :  { %1676 = vpow2.f32 %v552_v43 }
 0x506   :  { %588 = vmatpush.msra.mxu2 %v1621_v45 }
 0x508   :  { %589 = vmatpush.msra.mxu2 %v1622_v46 }
 0x509   :  { %1534 = vmatmul.msk.f32.vlgmr.msra.gmra.mxu2 %vm155_vm2, %v1675_v47 }
 0x50b   :  { %v1677_v48 = vpop.eup %1676  ;;  %v732_v49 = vpop.permute.xlu0 %731 }
 0x50c   :  { %v557_v50 = vsel %vm155_vm2, %v1677_v48, 0.0 }
 0x50d   :  { %558 = vadd.xlane.f32.xlu0 %v557_v50 }
 0x50e   :  { %883 = vrot.lane.b32.xlu1 %v1986_v55, %s1789_s19  ;;  %v888_v55 = vpop.permute.xlu2 %887 }
 0x511   :  { %1535 = vmatmul.msk.f32.gmra.mxu2 %vm155_vm2, %v1677_v48 }
 0x513   :  { %v1019_v51 = vpop.permute.xlu0 %1018 }
 0x514   :  { %1562 = vmatpush.xpose.msk.msrb.mxu3 %vm121_vm1, %v1019_v51 }
 0x515   :  { %885 = vrot.lane.b32.xlu2 %v2020_v39, %s1789_s19  ;;  %v554_v39 = vsel %vm155_vm2, %v1675_v47, 0.0 }
 0x518   :  { %v734_v53 = vpop.permute.xlu1 %733 }
 0x519   :  { %1544 = vmatpush.xpose.msk.msrb.mxu2 %vm121_vm1, %v734_v53 }
 0x51b   :  { %v890_v54 = vpop.permute.xlu0 %889 }
 0x51d   :  { %1545 = vmatpush.xpose.msk.msrb.mxu2 %vm121_vm1, %v732_v49 }
 0x520   :  { %v730_v56 = vpop.permute.xlu1 %729  ;;  %1546 = vmatmul.msk.f32.vlgmr.msrb.gmra.mxu2 %vm121_vm1, %v728_v52 }
 0x521   :  { %1554 = vmatpush.xpose.msk.msra.mxu2 %vm121_vm1, %v890_v54  ;;  %1624 = vrot.lane.b32.xlu0 %v2032_v41, %s1787_s15 }
 0x523   :  { %v1013_v0 = vpop.permute.xlu0 %1012 }
 0x525   :  { %1555 = vmatpush.xpose.msk.msra.mxu2 %vm121_vm1, %v888_v55 }
 0x528   :  { %v1017_v57 = vpop.permute.xlu1 %1016  ;;  %1547 = vmatmul.msk.f32.gmra.mxu2 %vm121_vm1, %v730_v56 }
 0x529   :  { %1634 = vrot.lane.b32.xlu0 %v2032_v41, %s1790_s20  ;;  %1563 = vmatpush.xpose.msk.msrb.mxu3 %vm121_vm1, %v1017_v57 }
 0x52b   :  { %v1015_v9 = vpop.permute.xlu0 %1014 }
 0x538   :  { %555 = vadd.xlane.f32.xlu1 %v554_v39 }
 0x568   :  { %v684_v58 = vpop.xlane.xlu1 %683 }
 0x569   :  { %1678 = vrcp.f32 %v684_v58 }
 0x56f   :  { %v1679_v61 = vpop.eup %1678 }
 0x570   :  { %v687_v60 = vpop.xlane.xlu2 %686 }
 0x571   :  { %1680 = vrcp.f32 %v687_v60 }
 0x577   :  { %v719_v62 = vpop.f32.mrf.mxu3  ;;  %v1681_v1 = vpop.eup %1680 }
 0x578   :  { %v725_v63 = vmul.f32 %v1679_v61, %v719_v62  ;;  %v886_v14 = vpop.permute.xlu2 %885 }
 0x57a   :  { %1552 = vmatmul.msk.f32.vlgmr.msra.gmra.mxu3 %vm121_vm1, %v725_v63 }
 0x57f   :  { %v722_v2 = vpop.f32.mrf.mxu3 }
 0x580   :  { %v726_v3 = vmul.f32 %v1681_v1, %v722_v2  ;;  %v884_v7 = vpop.permute.xlu1 %883  ;;  %v559_v15 = vpop.xlane.xlu0 %558 }
 0x581   :  { %1556 = vmatmul.msk.f32.vlgmr.msra.gmra.mxu2 %vm121_vm1, %v884_v7 }
 0x582   :  { %1553 = vmatmul.msk.f32.gmra.mxu3 %vm121_vm1, %v726_v3 }
 0x589   :  { %1557 = vmatmul.msk.f32.gmra.mxu2 %vm121_vm1, %v886_v14 }
 0x58a   :  { %1564 = vmatmul.msk.f32.vlgmr.msrb.gmra.mxu3 %vm121_vm1, %v1013_v0 }
 0x58c   :  { %v591_v16 = vpop.f32.mrf.mxu2 }
 0x592   :  { %1565 = vmatmul.msk.f32.gmra.mxu3 %vm121_vm1, %v1015_v9 }
 0x593   :  { %v1625_v18 = vpop.permute.xlu0 %1624 }
 0x594   :  { %v1626_v19 = vunpack.i.l.bf16 %v1625_v18  ;;  %v1627_v20 = vunpack.i.h.bf16 %v1625_v18  ;;  %v594_v21 = vpop.f32.mrf.mxu2 }
 0x596   :  { %814 = vmatpush.msra.mxu0 %v1626_v19 }
 0x598   :  { %815 = vmatpush.msra.mxu0 %v1627_v20 }
 0x59b   :  { %v1635_v11 = vpop.permute.xlu0 %1634 }
 0x59c   :  { %v1636_v33 = vunpack.i.l.bf16 %v1635_v11  ;;  %v1637_v34 = vunpack.i.h.bf16 %v1635_v11 }
 0x5a3   :  { %v760_v22 = vpop.f32.mrf.mxu2 }
 0x5a4   :  { %v766_v24 = vmul.f32 0.35355338, %v760_v22 }
 0x5a6   :  { %v768_v25 = vsel %vm155_vm2, %v766_v24, -inf }
 0x5a7   :  { %769 = vmax.xlane.f32.xlu2 %v768_v25 }
 0x5ab   :  { %v556_v26 = vpop.xlane.xlu1 %555  ;;  %v763_v28 = vpop.f32.mrf.mxu2 }
 0x5ac   :  { %1682 = vrcp.f32 %v556_v26  ;;  %v767_v29 = vmul.f32 0.35355338, %v763_v28 }
 0x5ad   :  { %1684 = vrcp.f32 %v559_v15 }
 0x5ae   :  { %v771_v30 = vsel %vm155_vm2, %v767_v29, -inf }
 0x5af   :  { %772 = vmax.xlane.f32.xlu1 %v771_v30 }
 0x5b2   :  { %v1683_v31 = vpop.eup %1682 }
 0x5b3   :  { %v597_v32 = vmul.f32 %v1683_v31, %v591_v16  ;;  %v1685_v35 = vpop.eup %1684 }
 0x5b4   :  { %v598_v36 = vmul.f32 %v1685_v35, %v594_v21 }
 0x5b5   :  { %1536 = vmatmul.msk.f32.vlgmr.msrb.gmra.mxu0 %vm121_vm1, %v597_v32  ;;  %v2155_v32 = vld [vmem:[%s2314_s4] ss:$0 sm:$0xff] }
 0x5b6   :  { %970 = vmatpush.msrb.mxu0 %v1636_v33 }
 0x5b8   :  { %971 = vmatpush.msrb.mxu0 %v1637_v34 }
 0x5bd   :  { %1537 = vmatmul.msk.f32.gmra.mxu0 %vm121_vm1, %v598_v36 }
 0x5fd   :  { %v2129_v37 = vpop.f32.mrf.mxu3 }
 0x604   :  { %v916_v38 = vpop.f32.mrf.mxu2 }
 0x605   :  { %v922_v40 = vmul.f32 0.35355338, %v916_v38  ;;  %v2131_v6 = vpop.f32.mrf.mxu3 }
 0x607   :  { %v924_v27 = vsel %vm155_vm2, %v922_v40, -inf }
 0x608   :  { %925 = vmax.xlane.f32.xlu1 %v924_v27 }
 0x60c   :  { %v919_v46 = vpop.f32.mrf.mxu2 }
 0x60d   :  { %v1045_v8 = vpop.f32.mrf.mxu3  ;;  %v923_v49 = vmul.f32 0.35355338, %v919_v46 }
 0x60e   :  { %v1051_v10 = vmul.f32 0.35355338, %v1045_v8 }
 0x60f   :  { %v927_v51 = vsel %vm155_vm2, %v923_v49, -inf }
 0x610   :  { %v1053_v42 = vsel %vm155_vm2, %v1051_v10, -inf }
 0x611   :  { %1054 = vmax.xlane.f32.xlu2 %v1053_v42 }
 0x615   :  { %v1048_v43 = vpop.f32.mrf.mxu3 }
 0x616   :  { %v1052_v44 = vmul.f32 0.35355338, %v1048_v43 }
 0x618   :  { %v1056_v45 = vsel %vm155_vm2, %v1052_v44, -inf }
 0x619   :  { %1057 = vmax.xlane.f32.xlu2 %v1056_v45 }
 0x61a   :  { %v770_v47 = vpop.xlane.xlu2 %769 }
 0x61b   :  { %v774_v48 = vsub.f32 %v766_v24, %v770_v47 }
 0x61d   :  { %v776_v50 = vmul.f32 1.442695, %v774_v48 }
 0x61f   :  { %1686 = vpow2.f32 %v776_v50 }
 0x621   :  { %928 = vmax.xlane.f32.xlu2 %v927_v51  ;;  %1629 = vrot.lane.b32.xlu1 %v2032_v41, %s1793_s2 }
 0x622   :  { %v773_v52 = vpop.xlane.xlu1 %772 }
 0x623   :  { %v775_v53 = vsub.f32 %v767_v29, %v773_v52 }
 0x625   :  { %v1687_v54 = vpop.eup %1686  ;;  %v778_v56 = vmul.f32 1.442695, %v775_v53 }
 0x626   :  { %1548 = vmatmul.msk.f32.vlgmr.msra.gmra.mxu0 %vm155_vm2, %v1687_v54  ;;  %v780_v55 = vsel %vm155_vm2, %v1687_v54, 0.0 }
 0x627   :  { %1688 = vpow2.f32 %v778_v56  ;;  %1131 = vmatpush.msra.mxu0 %v2116_v59 }
 0x629   :  { %781 = vadd.xlane.f32.xlu2 %v780_v55 }
 0x62d   :  { %v1689_v57 = vpop.eup %1688 }
 0x62e   :  { %1549 = vmatmul.msk.f32.gmra.mxu0 %vm155_vm2, %v1689_v57  ;;  %v783_v39 = vsel %vm155_vm2, %v1689_v57, 0.0  ;;  %v1794_v57 = vmov 32.0  }
 0x62f   :  { %784 = vadd.xlane.f32.xlu0 %v783_v39 }
 0x632   :  { %v623_v7 = vpop.f32.mrf.mxu0 }
 0x633   :  { %v629_v31 = vadd.f32 %v623_v7, %v2060_v17 }
 0x635   :  { %v1145_v34 = vadd.f32 %v2155_v32, %v629_v31 }
 0x637   :  { %v1149_v17 = vadd.f32 %v1145_v34, %v1887_v4  ;;  %v1267_v34 = vld [vmem:[#allocation2 + $0x18] sm:$0xff] }
 0x63a   :  { %v626_v22 = vpop.f32.mrf.mxu0 }
 0x67b   :  { %v926_v58 = vpop.xlane.xlu1 %925 }
 0x67c   :  { %v930_v41 = vsub.f32 %v922_v40, %v926_v58  ;;  %v630_v40 = vadd.f32 %v626_v22, %v2063_v23 }
 0x67e   :  { %v932_v60 = vmul.f32 1.442695, %v930_v41  ;;  %v1146_v8 = vadd.f32 %v2155_v32, %v630_v40 }
 0x680   :  { %1690 = vpow2.f32 %v932_v60  ;;  %v1150_v42 = vadd.f32 %v1146_v8, %v1894_v5 }
 0x682   :  { %v1158_v43 = vsel %vm73_vm0, %v1150_v42, 0.0 }
 0x684   :  { %v1055_v61 = vpop.xlane.xlu2 %1054 }
 0x685   :  { %v1059_v62 = vsub.f32 %v1051_v10, %v1055_v61  ;;  %v1155_v10 = vsel %vm73_vm0, %v1149_v17, 0.0 }
 0x686   :  { %v1691_v63 = vpop.eup %1690 }
 0x687   :  { %v1061_v0 = vmul.f32 1.442695, %v1059_v62  ;;  %1558 = vmatmul.msk.f32.vlgmr.msrb.gmra.mxu0 %vm155_vm2, %v1691_v63  ;;  %v936_v59 = vsel %vm155_vm2, %v1691_v63, 0.0 }
 0x688   :  { %937 = vadd.xlane.f32.xlu2 %v936_v59 }
 0x689   :  { %1692 = vpow2.f32 %v1061_v0 }
 0x68c   :  { %v1058_v1 = vpop.xlane.xlu2 %1057 }
 0x68d   :  { %v1060_v9 = vsub.f32 %v1052_v44, %v1058_v1 }
 0x68f   :  { %v1693_v2 = vpop.eup %1692  ;;  %v1063_v19 = vmul.f32 1.442695, %v1060_v9 }
 0x690   :  { %v1065_v3 = vsel %vm155_vm2, %v1693_v2, 0.0 }
 0x691   :  { %1066 = vadd.xlane.f32.xlu1 %v1065_v3 }
 0x693   :  { %v1630_v14 = vpop.permute.xlu1 %1629 }
 0x694   :  { %v1631_v15 = vunpack.i.l.bf16 %v1630_v14  ;;  %v929_v16 = vpop.xlane.xlu2 %928  ;;  %v1632_v20 = vunpack.i.h.bf16 %v1630_v14 }
 0x695   :  { %v931_v18 = vsub.f32 %v923_v49, %v929_v16 }
 0x696   :  { %1099 = vmatpush.msrb.mxu2 %v1631_v15 }
 0x697   :  { %v934_v21 = vmul.f32 1.442695, %v931_v18 }
 0x698   :  { %1100 = vmatpush.msrb.mxu2 %v1632_v20 }
 0x699   :  { %1694 = vpow2.f32 %v934_v21  ;;  %1566 = vmatmul.msk.f32.vlgmr.msrb.gmra.mxu2 %vm155_vm2, %v1693_v2 }
 0x69a   :  { %1696 = vpow2.f32 %v1063_v19 }
 0x69c   :  { %v782_v24 = vpop.xlane.xlu2 %781 }
 0x69d   :  { %1698 = vrcp.f32 %v782_v24 }
 0x69f   :  { %v1695_v25 = vpop.eup %1694 }
 0x6a0   :  { %v1697_v26 = vpop.eup %1696  ;;  %1559 = vmatmul.msk.f32.gmra.mxu0 %vm155_vm2, %v1695_v25  ;;  %v939_v28 = vsel %vm155_vm2, %v1695_v25, 0.0 }
 0x6a1   :  { %940 = vadd.xlane.f32.xlu2 %v939_v28  ;;  %1567 = vmatmul.msk.f32.gmra.mxu2 %vm155_vm2, %v1697_v26  ;;  %v1068_v35 = vsel %vm155_vm2, %v1697_v26, 0.0 }
 0x6a2   :  { %v785_v29 = vpop.xlane.xlu0 %784 }
 0x6a3   :  { %v1699_v30 = vpop.eup %1698  ;;  %v817_v11 = vpop.f32.mrf.mxu0  ;;  %1700 = vrcp.f32 %v785_v29 }
 0x6a4   :  { %v823_v33 = vmul.f32 %v1699_v30, %v817_v11 }
 0x6a6   :  { %1550 = vmatmul.msk.f32.vlgmr.msra.gmra.mxu1 %vm121_vm1, %v823_v33 }
 0x6a7   :  { %1296 = vmatpush.msra.mxu1 %v1267_v34 }
 0x6a9   :  { %1069 = vadd.xlane.f32.xlu2 %v1068_v35  ;;  %v1701_v36 = vpop.eup %1700 }
 0x6ab   :  { %v820_v38 = vpop.f32.mrf.mxu0 }
 0x6ac   :  { %v824_v27 = vmul.f32 %v1701_v36, %v820_v38  ;;  %v1265_v38 = vld [vmem:[#allocation2 + $0x8] sm:$0xff] }
 0x6ae   :  { %1551 = vmatmul.msk.f32.gmra.mxu1 %vm121_vm1, %v824_v27  ;;  %v1264_v27 = vld [vmem:[#allocation2] sm:$0xff] }
 0x6b1   :  { %1156 = vadd.xlane.f32.xlu2 %v1155_v10 }
 0x6b9   :  { %1159 = vadd.xlane.f32.xlu2 %v1158_v43 }
 0x6fb   :  { %v938_v44 = vpop.xlane.xlu2 %937 }
 0x6fc   :  { %1702 = vrcp.f32 %v938_v44 }
 0x702   :  { %v1703_v45 = vpop.eup %1702 }
 0x704   :  { %v973_v46 = vpop.f32.mrf.mxu0  ;;  %v1067_v4 = vpop.xlane.xlu1 %1066 }
 0x705   :  { %v979_v23 = vmul.f32 %v1703_v45, %v973_v46  ;;  %1704 = vrcp.f32 %v1067_v4 }
 0x707   :  { %1560 = vmatmul.msk.f32.vlgmr.msrb.gmra.mxu1 %vm121_vm1, %v979_v23 }
 0x70b   :  { %v1705_v48 = vpop.eup %1704 }
 0x714   :  { %v941_v47 = vpop.xlane.xlu2 %940 }
 0x715   :  { %1706 = vrcp.f32 %v941_v47 }
 0x71b   :  { %v1707_v51 = vpop.eup %1706 }
 0x71c   :  { %v1070_v49 = vpop.xlane.xlu2 %1069  ;;  %v1102_v50 = vpop.f32.mrf.mxu2 }
 0x71d   :  { %1708 = vrcp.f32 %v1070_v49  ;;  %v1108_v5 = vmul.f32 %v1705_v48, %v1102_v50  ;;  %v976_v52 = vpop.f32.mrf.mxu0 }
 0x71e   :  { %v980_v53 = vmul.f32 %v1707_v51, %v976_v52  ;;  %1710 = vrcp.f32 %v1794_v57 }
 0x71f   :  { %1568 = vmatmul.msk.f32.vlgmr.msra.gmra.mxu0 %vm121_vm1, %v1108_v5 }
 0x720   :  { %1561 = vmatmul.msk.f32.gmra.mxu1 %vm121_vm1, %v980_v53 }
 0x723   :  { %v1709_v54 = vpop.eup %1708  ;;  %v848_v39 = vpop.f32.mrf.mxu1 }
 0x724   :  { %v1105_v56 = vpop.f32.mrf.mxu2  ;;  %v1711_v58 = vpop.eup %1710  ;;  %v878_v59 = vadd.f32 %v2129_v37, %v848_v39 }
 0x725   :  { %v1109_v55 = vmul.f32 %v1709_v54, %v1105_v56  ;;  %v1168_v41 = vmul.f32 32.0, %v1711_v58  ;;  %vm1172_vm3 = vweird.f32 %v1711_v58  ;;  %v1157_v1 = vpop.xlane.xlu2 %1156 }
 0x727   :  { %1569 = vmatmul.msk.f32.gmra.mxu0 %vm121_vm1, %v1109_v55  ;;  %v1169_v60 = vsub.f32 1.0, %v1168_v41  ;;  %v2206_v55 = vld [vmem:[%s2319_s9] ss:$0 sm:$0xff]  ;;  %vm1329_vm1 = vcmask 523264   ;;  %s1489_s9 = sshll.u32 %s2323_s13, 4  ;;  %s1490_s9 = int_to_ptr.hbm [resolvable:$true] %s1489_s9 }
 0x728   :  { %v2211_v41 = vld [vmem:[%s2320_s10] ss:$0 sm:$0xff] }
 0x729   :  { %v1170_v62 = vmul.f32 %v1711_v58, %v1169_v60 }
 0x72b   :  { %v851_v61 = vpop.f32.mrf.mxu1  ;;  %v1171_v63 = vadd.f32 %v1711_v58, %v1170_v62 }
 0x72c   :  { %v881_v18 = vadd.f32 %v2131_v6, %v851_v61 }
 0x72d   :  { %v2172_v3 = vsel %vm1172_vm3, %v1711_v58, %v1171_v63  ;;  %v1160_v22 = vpop.xlane.xlu2 %1159 }
 0x72e   :  { %v1174_v14 = vmul.f32 %v2172_v3, %v1157_v1  ;;  %v1175_v26 = vmul.f32 %v2172_v3, %v1160_v22  ;;  %v1319_v22 = vld [vmem:[%s2317_s7 + $0x10] sm:$0xff] }
 0x730   :  { %v1178_v20 = vsub.f32 %v1149_v17, %v1174_v14  ;;  %v2182_v11 = vsub.f32 %v1150_v42, %v1175_v26  ;;  %v1323_v14 = vld [vmem:[%s2317_s7 + $0x30] sm:$0xff]  ;;  %v1317_v26 = vld [vmem:[%s2317_s7] sm:$0xff] }
 0x732   :  { %v1182_v29 = vmul.f32 %v1178_v20, %v1178_v20  ;;  %v1183_v31 = vmul.f32 %v2182_v11, %v2182_v11 }
 0x734   :  { %v1186_v6 = vsel %vm73_vm0, %v1182_v29, 0.0  ;;  %v1189_v33 = vsel %vm73_vm0, %v1183_v31, 0.0 }
 0x784   :  { %v1004_v0 = vpop.f32.mrf.mxu1 }
 0x785   :  { %v1010_v2 = vadd.f32 %v1004_v0, %v878_v59 }
 0x79c   :  { %v1133_v7 = vpop.f32.mrf.mxu0 }
 0x79d   :  { %v1139_v9 = vadd.f32 %v1133_v7, %v1010_v2  ;;  %v1007_v16 = vpop.f32.mrf.mxu1 }
 0x79e   :  { %v1011_v21 = vadd.f32 %v1007_v16, %v881_v18  ;;  %v1322_v16 = vld [vmem:[%s2317_s7 + $0x28] sm:$0xff] }
 0x79f   :  { %v1147_v15 = vadd.f32 %v2155_v32, %v1139_v9  ;;  %v1324_v9 = vld [vmem:[%s2317_s7 + $0x38] sm:$0xff] }
 0x7a0   :  { %1350 = vmatpush.msra.mxu3 %v1324_v9 }
 0x7a1   :  { %v1151_v19 = vadd.f32 %v1147_v15, %v1932_v12 }
 0x7a2   :  { %1351 = vmatpush.msra.mxu3 %v1323_v14 }
 0x7a3   :  { %v1161_v37 = vsel %vm73_vm0, %v1151_v19, 0.0 }
 0x7a4   :  { %v1136_v24 = vpop.f32.mrf.mxu0  ;;  %1162 = vadd.xlane.f32.xlu0 %v1161_v37  ;;  %1352 = vmatpush.msra.mxu3 %v1322_v16 }
 0x7a5   :  { %v1140_v25 = vadd.f32 %v1136_v24, %v1011_v21  ;;  %v1320_v21 = vld [vmem:[%s2317_s7 + $0x18] sm:$0xff] }
 0x7a7   :  { %v1148_v28 = vadd.f32 %v2155_v32, %v1140_v25  ;;  %v1318_v25 = vld [vmem:[%s2317_s7 + $0x8] sm:$0xff] }
 0x7a9   :  { %v1152_v30 = vadd.f32 %v1148_v28, %v1939_v13  ;;  %v1266_v13 = vld [vmem:[#allocation2 + $0x10] sm:$0xff] }
 0x7aa   :  { %1297 = vmatpush.msra.mxu1 %v1266_v13 }
 0x7ab   :  { %v1164_v12 = vsel %vm73_vm0, %v1152_v30, 0.0 }
 0x7ac   :  { %1187 = vadd.xlane.f32.xlu0 %v1186_v6  ;;  %1165 = vadd.xlane.f32.xlu2 %v1164_v12 }
 0x7ad   :  { %1298 = vmatpush.msra.mxu1 %v1265_v38 }
 0x7af   :  { %1299 = vmatpush.msra.mxu1 %v1264_v27 }
 0x7b4   :  { %1190 = vadd.xlane.f32.xlu2 %v1189_v33 }
 0x817   :  { %v1163_v35 = vpop.xlane.xlu0 %1162 }
 0x818   :  { %v1176_v32 = vmul.f32 %v2172_v3, %v1163_v35 }
 0x81a   :  { %v2190_v36 = vsub.f32 %v1151_v19, %v1176_v32  ;;  %v1321_v19 = vld [vmem:[%s2317_s7 + $0x20] sm:$0xff] }
 0x81b   :  { %1353 = vmatpush.msra.mxu3 %v1321_v19 }
 0x81c   :  { %v1184_v40 = vmul.f32 %v2190_v36, %v2190_v36 }
 0x81d   :  { %1354 = vmatpush.msra.mxu3 %v1320_v21 }
 0x81e   :  { %v1192_v17 = vsel %vm73_vm0, %v1184_v40, 0.0 }
 0x81f   :  { %1193 = vadd.xlane.f32.xlu1 %v1192_v17  ;;  %v1188_v8 = vpop.xlane.xlu0 %1187  ;;  %v1166_v10 = vpop.xlane.xlu2 %1165  ;;  %1355 = vmatpush.msra.mxu3 %v1319_v22 }
 0x820   :  { %v1198_v42 = vmul.f32 %v1188_v8, %v2172_v3  ;;  %v1177_v43 = vmul.f32 %v2172_v3, %v1166_v10 }
 0x821   :  { %1356 = vmatpush.msra.mxu3 %v1318_v25 }
 0x822   :  { %v1202_v44 = vadd.f32 1e-05, %v1198_v42  ;;  %v2197_v45 = vsub.f32 %v1152_v30, %v1177_v43 }
 0x823   :  { %1357 = vmatpush.msra.mxu3 %v1317_v26 }
 0x824   :  { %1712 = vrsqrt.f32 %v1202_v44  ;;  %v1185_v46 = vmul.f32 %v2197_v45, %v2197_v45  ;;  %vm1212_vm5 = vweird.f32 %v1202_v44 }
 0x826   :  { %v1195_v23 = vsel %vm73_vm0, %v1185_v46, 0.0 }
 0x827   :  { %1196 = vadd.xlane.f32.xlu0 %v1195_v23  ;;  %v1191_v4 = vpop.xlane.xlu2 %1190 }
 0x828   :  { %v1199_v47 = vmul.f32 %v1191_v4, %v2172_v3 }
 0x82a   :  { %v1713_v48 = vpop.eup %1712  ;;  %v1203_v49 = vadd.f32 1e-05, %v1199_v47 }
 0x82b   :  { %v1207_v50 = vmul.f32 %v1713_v48, %v1202_v44  ;;  %vm1213_vm4 = vweird.f32 %v1713_v48 }
 0x82c   :  { %1714 = vrsqrt.f32 %v1203_v49  ;;  %vm1214_vm6 = vmor %vm1212_vm5, %vm1213_vm4  ;;  %vm1222_vm8 = vweird.f32 %v1203_v49 }
 0x82d   :  { %v1208_v51 = vmul.f32 %v1713_v48, %v1207_v50 }
 0x82f   :  { %v1209_v5 = vmul.f32 0.5, %v1208_v51 }
 0x831   :  { %v1210_v52 = vsub.f32 1.5, %v1209_v5 }
 0x832   :  { %v1715_v53 = vpop.eup %1714 }
 0x833   :  { %v1211_v54 = vmul.f32 %v1713_v48, %v1210_v52  ;;  %v1217_v56 = vmul.f32 %v1715_v53, %v1203_v49  ;;  %vm1223_vm7 = vweird.f32 %v1715_v53 }
 0x834   :  { %vm1224_vm9 = vmor %vm1222_vm8, %vm1223_vm7 }
 0x835   :  { %v1215_v57 = vsel %vm1214_vm6, %v1713_v48, %v1211_v54  ;;  %v1218_v39 = vmul.f32 %v1715_v53, %v1217_v56  ;;  %v1643_v54 = vld [vmem:[%s2318_s8] ss:$0 sm:$0xff] }
 0x836   :  { %v1246_v58 = vmul.f32 %v1215_v57, %v1178_v20 }
 0x837   :  { %v1219_v60 = vmul.f32 0.5, %v1218_v39 }
 0x838   :  { %v1253_v61 = vmul.f32 %v2206_v55, %v1246_v58 }
 0x839   :  { %v1220_v62 = vsub.f32 1.5, %v1219_v60 }
 0x83a   :  { %v2215_v63 = vadd.f32 %v2211_v41, %v1253_v61 }
 0x83b   :  { %v1221_v0 = vmul.f32 %v1715_v53, %v1220_v62 }
 0x83c   :  { %1570 = vmatmul.msk.f32.vlgmr.msra.gmra.mxu1 %vm73_vm0, %v2215_v63 }
 0x83d   :  { %v1225_v59 = vsel %vm1224_vm9, %v1715_v53, %v1221_v0 }
 0x83e   :  { %v1247_v1 = vmul.f32 %v1225_v59, %v2182_v11 }
 0x840   :  { %v1254_v2 = vmul.f32 %v2206_v55, %v1247_v1 }
 0x842   :  { %v2222_v7 = vadd.f32 %v2211_v41, %v1254_v2 }
 0x844   :  { %1571 = vmatmul.msk.f32.gmra.mxu1 %vm73_vm0, %v2222_v7 }
 0x892   :  { %v1194_v15 = vpop.xlane.xlu1 %1193 }
 0x893   :  { %v1200_v18 = vmul.f32 %v1194_v15, %v2172_v3 }
 0x895   :  { %v1204_v20 = vadd.f32 1e-05, %v1200_v18 }
 0x897   :  { %1716 = vrsqrt.f32 %v1204_v20  ;;  %vm1232_vm11 = vweird.f32 %v1204_v20 }
 0x89a   :  { %v1197_v37 = vpop.xlane.xlu0 %1196 }
 0x89b   :  { %v1201_v24 = vmul.f32 %v1197_v37, %v2172_v3 }
 0x89d   :  { %v1717_v28 = vpop.eup %1716  ;;  %v1205_v29 = vadd.f32 1e-05, %v1201_v24 }
 0x89e   :  { %v1227_v30 = vmul.f32 %v1717_v28, %v1204_v20  ;;  %vm1233_vm10 = vweird.f32 %v1717_v28 }
 0x89f   :  { %1718 = vrsqrt.f32 %v1205_v29  ;;  %vm1234_vm12 = vmor %vm1232_vm11, %vm1233_vm10  ;;  %vm1242_vm14 = vweird.f32 %v1205_v29 }
 0x8a0   :  { %v1228_v11 = vmul.f32 %v1717_v28, %v1227_v30 }
 0x8a2   :  { %v1229_v6 = vmul.f32 0.5, %v1228_v11 }
 0x8a4   :  { %v1230_v12 = vsub.f32 1.5, %v1229_v6 }
 0x8a5   :  { %v1719_v31 = vpop.eup %1718 }
 0x8a6   :  { %v1231_v33 = vmul.f32 %v1717_v28, %v1230_v12  ;;  %v1237_v34 = vmul.f32 %v1719_v31, %v1205_v29  ;;  %vm1243_vm13 = vweird.f32 %v1719_v31 }
 0x8a7   :  { %vm1244_vm15 = vmor %vm1242_vm14, %vm1243_vm13 }
 0x8a8   :  { %v1235_v35 = vsel %vm1234_vm12, %v1717_v28, %v1231_v33  ;;  %v1238_v32 = vmul.f32 %v1719_v31, %v1237_v34 }
 0x8a9   :  { %v1248_v13 = vmul.f32 %v1235_v35, %v2190_v36  ;;  %v1642_v36 = vld [vmem:[%s2316_s6] ss:$0 sm:$0xff] }
 0x8aa   :  { %v1239_v38 = vmul.f32 0.5, %v1238_v32 }
 0x8ab   :  { %v1255_v40 = vmul.f32 %v2206_v55, %v1248_v13 }
 0x8ac   :  { %v1240_v27 = vsub.f32 1.5, %v1239_v38 }
 0x8ad   :  { %v1262_v17 = vadd.f32 %v2211_v41, %v1255_v40 }
 0x8ae   :  { %v1241_v8 = vmul.f32 %v1719_v31, %v1240_v27 }
 0x8af   :  { %1572 = vmatmul.msk.f32.gmra.mxu1 %vm73_vm0, %v1262_v17 }
 0x8b0   :  { %v1245_v10 = vsel %vm1244_vm15, %v1719_v31, %v1241_v8 }
 0x8b1   :  { %v1249_v42 = vmul.f32 %v1245_v10, %v2197_v45 }
 0x8b3   :  { %v1256_v43 = vmul.f32 %v2206_v55, %v1249_v42 }
 0x8b5   :  { %v1263_v44 = vadd.f32 %v2211_v41, %v1256_v43 }
 0x8b7   :  { %1573 = vmatmul.msk.f32.gmra.mxu1 %vm73_vm0, %v1263_v44 }
 0x8b9   :  { %v1301_v46 = vpop.f32.mrf.mxu1 }
 0x8ba   :  { %v1302_v23 = vadd.f32 %v1642_v36, %v1301_v46  ;;  %v1644_v46 = vld [vmem:[%s2321_s11] ss:$0 sm:$0xff]  ;;  %s1795_s11 = smov [#allocation5]  }
 0x8bc   :  { %v1313_v4 = vmax.f32 %v1302_v23, 0.0 }
 0x8be   :  { %1574 = vmatmul.msk.f32.vlgmr.msra.gmra.mxu3 %vm1329_vm1, %v1313_v4 }
 0x8c1   :  { %v1304_v47 = vpop.f32.mrf.mxu1 }
 0x8c2   :  { %v1305_v48 = vadd.f32 %v1642_v36, %v1304_v47  ;;  %v1645_v47 = vld [vmem:[%s2322_s12] ss:$0 sm:$0xff]  ;;  %s1487_s12 = sshll.u32 %s1795_s11, 4  ;;  %s1488_s12 = int_to_ptr.vmem [resolvable:$true] %s1487_s12 }
 0x8c4   :  { %v1314_v49 = vmax.f32 %v1305_v48, 0.0 }
 0x8c6   :  { %1575 = vmatmul.msk.f32.gmra.mxu3 %vm1329_vm1, %v1314_v49 }
 0x92c   :  { %v1307_v45 = vpop.f32.mrf.mxu1 }
 0x92d   :  { %v1308_v50 = vadd.f32 %v1642_v36, %v1307_v45 }
 0x92f   :  { %v1315_v51 = vmax.f32 %v1308_v50, 0.0 }
 0x931   :  { %1576 = vmatmul.msk.f32.gmra.mxu3 %vm1329_vm1, %v1315_v51 }
 0x934   :  { %v1310_v5 = vpop.f32.mrf.mxu1 }
 0x935   :  { %v1311_v52 = vadd.f32 %v1642_v36, %v1310_v5 }
 0x937   :  { %v1316_v53 = vmax.f32 %v1311_v52, 0.0 }
 0x939   :  { %1577 = vmatmul.msk.f32.gmra.mxu3 %vm1329_vm1, %v1316_v53 }
 0x941   :  { %v1359_v56 = vpop.f32.mrf.mxu3 }
 0x942   :  { %v1360_v55 = vadd.f32 %v1643_v54, %v1359_v56 }
 0x944   :  { %v1371_v57 = vadd.f32 %v1360_v55, %v2215_v63 }
 0x946   :  { %v1377_v39 = vsel %vm73_vm0, %v1371_v57, 0.0 }
 0x947   :  { %1378 = vadd.xlane.f32.xlu2 %v1377_v39 }
 0x949   :  { %v1362_v58 = vpop.f32.mrf.mxu3 }
 0x94a   :  { %v1363_v41 = vadd.f32 %v1643_v54, %v1362_v58 }
 0x94c   :  { %v1372_v60 = vadd.f32 %v1363_v41, %v2222_v7 }
 0x94e   :  { %v1380_v61 = vsel %vm73_vm0, %v1372_v60, 0.0 }
 0x94f   :  { %1381 = vadd.xlane.f32.xlu1 %v1380_v61 }
 0x9b4   :  { %v1365_v62 = vpop.f32.mrf.mxu3 }
 0x9b5   :  { %v1366_v0 = vadd.f32 %v1643_v54, %v1365_v62 }
 0x9b7   :  { %v1373_v59 = vadd.f32 %v1366_v0, %v1262_v17 }
 0x9b9   :  { %v1383_v1 = vsel %vm73_vm0, %v1373_v59, 0.0 }
 0x9ba   :  { %1384 = vadd.xlane.f32.xlu0 %v1383_v1  ;;  %v1379_v2 = vpop.xlane.xlu2 %1378 }
 0x9bb   :  { %v1389_v9 = vmul.f32 %v1379_v2, %v2172_v3 }
 0x9bc   :  { %v1368_v63 = vpop.f32.mrf.mxu3 }
 0x9bd   :  { %v1393_v14 = vsub.f32 %v1371_v57, %v1389_v9  ;;  %v1369_v15 = vadd.f32 %v1643_v54, %v1368_v63 }
 0x9bf   :  { %v1374_v16 = vadd.f32 %v1369_v15, %v1263_v44  ;;  %v1397_v18 = vmul.f32 %v1393_v14, %v1393_v14 }
 0x9c1   :  { %v1386_v19 = vsel %vm73_vm0, %v1374_v16, 0.0  ;;  %v1401_v7 = vsel %vm73_vm0, %v1397_v18, 0.0 }
 0x9c2   :  { %1387 = vadd.xlane.f32.xlu2 %v1386_v19  ;;  %v1382_v20 = vpop.xlane.xlu1 %1381  ;;  %1402 = vadd.xlane.f32.xlu1 %v1401_v7 }
 0x9c3   :  { %v1390_v21 = vmul.f32 %v1382_v20, %v2172_v3 }
 0x9c5   :  { %v1394_v37 = vsub.f32 %v1372_v60, %v1390_v21 }
 0x9c7   :  { %v1398_v22 = vmul.f32 %v1394_v37, %v1394_v37 }
 0x9c9   :  { %v1404_v24 = vsel %vm73_vm0, %v1398_v22, 0.0 }
 0x9ca   :  { %1405 = vadd.xlane.f32.xlu0 %v1404_v24 }
 0xa2d   :  { %v1385_v25 = vpop.xlane.xlu0 %1384 }
 0xa2e   :  { %v1391_v26 = vmul.f32 %v1385_v25, %v2172_v3 }
 0xa30   :  { %v2277_v28 = vsub.f32 %v1373_v59, %v1391_v26 }
 0xa32   :  { %v1399_v29 = vmul.f32 %v2277_v28, %v2277_v28 }
 0xa34   :  { %v1407_v30 = vsel %vm73_vm0, %v1399_v29, 0.0 }
 0xa35   :  { %1408 = vadd.xlane.f32.xlu2 %v1407_v30  ;;  %v1403_v11 = vpop.xlane.xlu1 %1402  ;;  %v1388_v6 = vpop.xlane.xlu2 %1387 }
 0xa36   :  { %v1413_v12 = vmul.f32 %v1403_v11, %v2172_v3  ;;  %v1392_v31 = vmul.f32 %v1388_v6, %v2172_v3 }
 0xa38   :  { %v1417_v33 = vadd.f32 1e-05, %v1413_v12  ;;  %v2284_v34 = vsub.f32 %v1374_v16, %v1392_v31 }
 0xa3a   :  { %1720 = vrsqrt.f32 %v1417_v33  ;;  %v1400_v35 = vmul.f32 %v2284_v34, %v2284_v34  ;;  %vm1427_vm3 = vweird.f32 %v1417_v33 }
 0xa3c   :  { %v1410_v32 = vsel %vm73_vm0, %v1400_v35, 0.0 }
 0xa3d   :  { %v1406_v13 = vpop.xlane.xlu0 %1405  ;;  %1411 = vadd.xlane.f32.xlu1 %v1410_v32 }
 0xa3e   :  { %v1414_v38 = vmul.f32 %v1406_v13, %v2172_v3 }
 0xa40   :  { %v1721_v40 = vpop.eup %1720  ;;  %v1418_v27 = vadd.f32 1e-05, %v1414_v38 }
 0xa41   :  { %v1422_v17 = vmul.f32 %v1721_v40, %v1417_v33  ;;  %vm1428_vm2 = vweird.f32 %v1721_v40 }
 0xa42   :  { %1722 = vrsqrt.f32 %v1418_v27  ;;  %vm1429_vm4 = vmor %vm1427_vm3, %vm1428_vm2  ;;  %vm1437_vm6 = vweird.f32 %v1418_v27 }
 0xa43   :  { %v1423_v8 = vmul.f32 %v1721_v40, %v1422_v17 }
 0xa45   :  { %v1424_v10 = vmul.f32 0.5, %v1423_v8 }
 0xa47   :  { %v1425_v42 = vsub.f32 1.5, %v1424_v10 }
 0xa48   :  { %v1723_v43 = vpop.eup %1722 }
 0xa49   :  { %v1426_v44 = vmul.f32 %v1721_v40, %v1425_v42  ;;  %v1432_v36 = vmul.f32 %v1723_v43, %v1418_v27  ;;  %vm1438_vm5 = vweird.f32 %v1723_v43 }
 0xa4a   :  { %vm1439_vm7 = vmor %vm1437_vm6, %vm1438_vm5 }
 0xa4b   :  { %v1430_v23 = vsel %vm1429_vm4, %v1721_v40, %v1426_v44  ;;  %v1433_v4 = vmul.f32 %v1723_v43, %v1432_v36 }
 0xa4c   :  { %v1461_v48 = vmul.f32 %v1430_v23, %v1393_v14 }
 0xa4d   :  { %v1434_v49 = vmul.f32 0.5, %v1433_v4 }
 0xa4e   :  { %v1468_v45 = vmul.f32 %v1644_v46, %v1461_v48 }
 0xa4f   :  { %v1435_v50 = vsub.f32 1.5, %v1434_v49 }
 0xa50   :  { %v1475_v51 = vadd.f32 %v1645_v47, %v1468_v45 }
 0xa51   :  { %v1436_v5 = vmul.f32 %v1723_v43, %v1435_v50 }
 0xa52   :  { %1479 = vst.msk [vmem:[#allocation5] sm:$0xff] %vm73_vm0, %v1475_v51 }
 0xa53   :  { %v1440_v52 = vsel %vm1439_vm7, %v1723_v43, %v1436_v5 }
 0xa54   :  { %v1462_v53 = vmul.f32 %v1440_v52, %v1394_v37 }
 0xa56   :  { %v1469_v54 = vmul.f32 %v1644_v46, %v1462_v53 }
 0xa58   :  { %v1476_v56 = vadd.f32 %v1645_v47, %v1469_v54 }
 0xa5a   :  { %1480 = vst.msk [vmem:[#allocation5 + $0x8] sm:$0xff] %vm73_vm0, %v1476_v56 }
 0xaa8   :  { %v1409_v55 = vpop.xlane.xlu2 %1408 }
 0xaa9   :  { %v1415_v57 = vmul.f32 %v1409_v55, %v2172_v3 }
 0xaab   :  { %v1419_v39 = vadd.f32 1e-05, %v1415_v57 }
 0xaad   :  { %1724 = vrsqrt.f32 %v1419_v39  ;;  %vm1447_vm9 = vweird.f32 %v1419_v39 }
 0xab0   :  { %v1412_v58 = vpop.xlane.xlu1 %1411 }
 0xab1   :  { %v1416_v41 = vmul.f32 %v1412_v58, %v2172_v3 }
 0xab3   :  { %v1725_v60 = vpop.eup %1724  ;;  %v1420_v61 = vadd.f32 1e-05, %v1416_v41 }
 0xab4   :  { %v1442_v62 = vmul.f32 %v1725_v60, %v1419_v39  ;;  %vm1448_vm8 = vweird.f32 %v1725_v60 }
 0xab5   :  { %1726 = vrsqrt.f32 %v1420_v61  ;;  %vm1449_vm10 = vmor %vm1447_vm9, %vm1448_vm8  ;;  %vm1457_vm12 = vweird.f32 %v1420_v61 }
 0xab6   :  { %v1443_v0 = vmul.f32 %v1725_v60, %v1442_v62 }
 0xab8   :  { %v1444_v59 = vmul.f32 0.5, %v1443_v0 }
 0xaba   :  { %v1445_v1 = vsub.f32 1.5, %v1444_v59 }
 0xabb   :  { %v1727_v2 = vpop.eup %1726 }
 0xabc   :  { %v1446_v9 = vmul.f32 %v1725_v60, %v1445_v1  ;;  %v1452_v63 = vmul.f32 %v1727_v2, %v1420_v61  ;;  %vm1458_vm11 = vweird.f32 %v1727_v2 }
 0xabd   :  { %vm1459_vm13 = vmor %vm1457_vm12, %vm1458_vm11 }
 0xabe   :  { %v1450_v14 = vsel %vm1449_vm10, %v1725_v60, %v1446_v9  ;;  %v1453_v15 = vmul.f32 %v1727_v2, %v1452_v63 }
 0xabf   :  { %v1463_v16 = vmul.f32 %v1450_v14, %v2277_v28 }
 0xac0   :  { %v1454_v18 = vmul.f32 0.5, %v1453_v15 }
 0xac1   :  { %v1470_v19 = vmul.f32 %v1644_v46, %v1463_v16 }
 0xac2   :  { %v1455_v3 = vsub.f32 1.5, %v1454_v18 }
 0xac3   :  { %v1477_v7 = vadd.f32 %v1645_v47, %v1470_v19 }
 0xac4   :  { %v1456_v20 = vmul.f32 %v1727_v2, %v1455_v3 }
 0xac5   :  { %1481 = vst.msk [vmem:[#allocation5 + $0x10] sm:$0xff] %vm73_vm0, %v1477_v7 }
 0xac6   :  { %v1460_v21 = vsel %vm1459_vm13, %v1727_v2, %v1456_v20 }
 0xac7   :  { %v1464_v37 = vmul.f32 %v1460_v21, %v2284_v34 }
 0xac9   :  { %v1471_v22 = vmul.f32 %v1644_v46, %v1464_v37 }
 0xacb   :  { %v1478_v24 = vadd.f32 %v1645_v47, %v1471_v22 }
 0xacd   :  { %1482 = vst.msk [vmem:[#allocation5 + $0x18] sm:$0xff] %vm73_vm0, %v1478_v24 }
 0xace   :  { %1495 = dma.vmem_to_hbm [thread:$0]  %s1488_s12, 512, %s1490_s9, [#allocation4], %s1781_s30, %s1781_s30, %s1782_s14  }
 0xacf   :  { %1778 = dma.done.wait [#allocation4], 512  }
 0xad0   :  { %1779 = vsyncadd [#allocation4], 4294966784 }
 0xad1   :  { %1500 = vsyncpa [#allocation3], 1 }
 0xad2   :  { %1501 = vsyncpa [#allocation4], 1 }

</bundles_post_ra>
